<compile_context>
chip_gen: v7x
topology: tpu7x:2x2x1
jax: 0.10.0
libtpu: 0.0.40
codegen_flags: <defaults>
</compile_context>

<pallas_src>
import functools

import jax
import jax.numpy as jnp
from jax import lax
from jax.experimental import pallas as pl
from jax.experimental.pallas import tpu as pltpu


# ------------------------------ fused kernel ---------------------------------

def _fused_mha_kernel(*refs, scale, num_heads, self_attn, has_mask):
    it = iter(refs)
    x_ref = next(it)                               # (1, Sq, E) query block
    k_in_ref = None if self_attn else next(it)     # (1, Sk, E) key block
    mask_ref = next(it) if has_mask else None      # (Sq, Sk) additive mask
    wq_ref = next(it)                              # (H, D, E)
    bq_ref = next(it)                              # (H, 1, D)
    wk_ref = next(it)                              # (H, D, E)
    bk_ref = next(it)                              # (H, 1, D)
    wv_ref = next(it)                              # (H, D, E)
    bv_ref = next(it)                              # (H, 1, D)
    wo_ref = next(it)                              # (H, D, E)
    bo_ref = next(it)                              # (1, E)
    o_ref = next(it)                               # (1, Sq, E)

    x = x_ref[0]                                   # (Sq, E)
    kx = x if self_attn else k_in_ref[0]           # (Sk, E)
    S_q, E = x.shape

    mask_f32 = mask_ref[...].astype(jnp.float32) if has_mask else None

    # Output-projection bias seeds the lane-dense (Sq, E) f32 accumulator.
    acc = jnp.broadcast_to(bo_ref[...].astype(jnp.float32), (S_q, E))

    trans_b = (((1,), (1,)), ((), ()))             # contract last dims (trans-B)

    # TODO(synk): per-head projection matmuls have output width D (<256), which
    # underfeeds the 256-wide MXU on v6e/v7x vs a single fused-width projection;
    # kept this layout because it avoids in-kernel lane slicing entirely.
    for h in range(num_heads):
        # Per-head projections (f32 accumulate): x @ Wq_h^T + bq_h, etc.
        q_h = lax.dot_general(x, wq_ref[h], trans_b,
                              preferred_element_type=jnp.float32)
        q_h = q_h + bq_ref[h].astype(jnp.float32)                  # (Sq, D)
        k_h = lax.dot_general(kx, wk_ref[h], trans_b,
                              preferred_element_type=jnp.float32)
        k_h = k_h + bk_ref[h].astype(jnp.float32)                  # (Sk, D)
        v_h = lax.dot_general(kx, wv_ref[h], trans_b,
                              preferred_element_type=jnp.float32)
        v_h = v_h + bv_ref[h].astype(jnp.float32)                  # (Sk, D)

        # Scores: bf16 MXU operands, f32 accumulation; softmax stays f32.
        s = lax.dot_general(q_h.astype(jnp.bfloat16),
                            k_h.astype(jnp.bfloat16),
                            trans_b, preferred_element_type=jnp.float32)
        s = s * scale
        if has_mask:
            s = s + mask_f32
        m = jnp.max(s, axis=-1, keepdims=True)
        p = jnp.exp(s - m)
        l = jnp.sum(p, axis=-1, keepdims=True)
        p = p * pl.reciprocal(l, approx=True)

        ctx_h = jnp.dot(p.astype(jnp.bfloat16), v_h.astype(jnp.bfloat16),
                        preferred_element_type=jnp.float32)        # (Sq, D)

        # Fused output projection: accumulate ctx_h @ Wo_h into (Sq, E).
        acc = acc + jnp.dot(ctx_h, wo_ref[h],
                            preferred_element_type=jnp.float32)

    o_ref[0] = acc.astype(o_ref.dtype)


# ---------------------------- module equivalent -------------------------------

class MultiheadAttentionPallas:
    """Pallas equivalent of pytorchocr rec_nrtr_head.MultiheadAttention."""

    def __init__(self, embed_dim, num_heads, dropout=0.0, self_attn=False, *,
                 rng=None):
        assert embed_dim % num_heads == 0
        self.embed_dim = embed_dim
        self.num_heads = num_heads
        self.head_dim = embed_dim // num_heads
        self.scale = self.head_dim ** (-0.5)
        self.self_attn = self_attn
        # TODO(synk): attn_drop is identity for dropout=0.0; stochastic dropout not implemented.
        assert dropout == 0.0

        if rng is None:
            rng = jax.random.PRNGKey(0)
        k = jax.random.split(rng, 8)
        std = 1.0 / (embed_dim ** 0.5)
        E, H, D = embed_dim, num_heads, self.head_dim

        def w(key, fan_in, fan_out):
            # stored transposed: (in, out)
            return jax.random.normal(key, (fan_in, fan_out), jnp.float32) * std

        def b(key, fan_out):
            return jax.random.normal(key, (fan_out,), jnp.float32) * std

        if self_attn:
            self.qkv_w = w(k[0], E, E * 3)
            self.qkv_b = b(k[1], E * 3)
            w3 = self.qkv_w.reshape(E, 3, H, D)
            self.wq_h = jnp.transpose(w3[:, 0], (1, 2, 0))   # (H, D, E)
            self.wk_h = jnp.transpose(w3[:, 1], (1, 2, 0))
            self.wv_h = jnp.transpose(w3[:, 2], (1, 2, 0))
            b3 = self.qkv_b.reshape(3, H, 1, D)
            self.bq_h, self.bk_h, self.bv_h = b3[0], b3[1], b3[2]
        else:
            self.q_w = w(k[0], E, E)
            self.q_b = b(k[1], E)
            self.kv_w = w(k[2], E, E * 2)
            self.kv_b = b(k[3], E * 2)
            self.wq_h = jnp.transpose(self.q_w.reshape(E, H, D), (1, 2, 0))
            self.bq_h = self.q_b.reshape(H, 1, D)
            wkv = self.kv_w.reshape(E, 2, H, D)
            self.wk_h = jnp.transpose(wkv[:, 0], (1, 2, 0))
            self.wv_h = jnp.transpose(wkv[:, 1], (1, 2, 0))
            bkv = self.kv_b.reshape(2, H, 1, D)
            self.bk_h, self.bv_h = bkv[0], bkv[1]

        self.out_w = w(k[4], E, E)
        self.out_b = b(k[5], E)
        self.wo_h = self.out_w.reshape(H, D, E)               # (H, D, E)
        self.bo_2d = self.out_b.reshape(1, E)

    def __call__(self, query, key=None, value=None, attn_mask=None):
        N, S_q, E = query.shape
        H, D = self.num_heads, self.head_dim
        if self.self_attn:
            if key is not None or value is not None:
                raise ValueError("self-attention mode: key/value must be None")
            S_k = S_q
        else:
            if key is None or value is None:
                raise ValueError("cross-attention mode: key/value required")
            # NOTE: like the PyTorch module, `value` is only None-checked; both
            # k and v are projected from `key` via kv_proj.
            S_k = key.shape[1]
        has_mask = attn_mask is not None

        kernel = functools.partial(
            _fused_mha_kernel, scale=self.scale, num_heads=H,
            self_attn=self.self_attn, has_mask=has_mask)

        args = [query]
        in_specs = [pl.BlockSpec((1, S_q, E), lambda n: (n, 0, 0))]
        if not self.self_attn:
            args.append(key)
            in_specs.append(pl.BlockSpec((1, S_k, E), lambda n: (n, 0, 0)))
        if has_mask:
            args.append(attn_mask.astype(jnp.float32))
            in_specs.append(pl.BlockSpec((S_q, S_k), lambda n: (0, 0)))

        # Grid-invariant weights/biases: constant index_map -> DMA'd once,
        # VMEM-resident across the batch grid.
        weights = [self.wq_h, self.bq_h, self.wk_h, self.bk_h,
                   self.wv_h, self.bv_h, self.wo_h, self.bo_2d]
        for arr in weights:
            args.append(arr)
            in_specs.append(
                pl.BlockSpec(arr.shape, lambda n, _nd=arr.ndim: (0,) * _nd))

        # Cost estimate (projections + attention) for XLA scheduling.
        proj_flops = 4 * N * (S_q + S_k) * E * E
        attn_flops = 4 * N * H * S_q * S_k * D
        in_bytes = 4 * (N * S_q * E
                        + (0 if self.self_attn else N * S_k * E)
                        + 4 * E * E + 3 * H * D + E
                        + (S_q * S_k if has_mask else 0))
        cost = pl.CostEstimate(flops=proj_flops + attn_flops,
                               transcendentals=N * H * S_q * S_k,
                               bytes_accessed=in_bytes + 4 * N * S_q * E)

        # VMEM budget: resident weights + double-buffered activation blocks,
        # capped well under v7x's 64 MiB per-core VMEM.
        act_elems = (2 * S_q + S_k) * E + (S_q * S_k if has_mask else 0)
        est = 4 * (4 * E * E + 3 * H * D + E) + 2 * 4 * act_elems
        vmem_limit = int(min(max(2 * est, 32 * 1024 * 1024), 48 * 1024 * 1024))

        out = pl.pallas_call(
            kernel,
            out_shape=jax.ShapeDtypeStruct((N, S_q, E), query.dtype),
            grid=(N,),
            in_specs=in_specs,
            out_specs=pl.BlockSpec((1, S_q, E), lambda n: (n, 0, 0)),
            compiler_params=pltpu.CompilerParams(
                dimension_semantics=("parallel",),
                vmem_limit_bytes=vmem_limit),
            cost_estimate=cost,
        )(*args)
        return out


# ------------------------------ pure-JAX reference ---------------------------

def reference(mod, query, key=None, value=None, attn_mask=None):
    N, S_q, E = query.shape
    H, D = mod.num_heads, mod.head_dim
    if mod.self_attn:
        qkv = query.reshape(N * S_q, E) @ mod.qkv_w + mod.qkv_b
        qkv = qkv.reshape(N, S_q, 3, H, D).transpose(2, 0, 3, 1, 4)
        q, k, v = qkv[0], qkv[1], qkv[2]
    else:
        S_k = key.shape[1]
        q = (query.reshape(N * S_q, E) @ mod.q_w + mod.q_b)
        q = q.reshape(N, S_q, H, D).transpose(0, 2, 1, 3)
        kv = key.reshape(N * S_k, E) @ mod.kv_w + mod.kv_b
        kv = kv.reshape(N, S_k, 2, H, D).transpose(2, 0, 3, 1, 4)
        k, v = kv[0], kv[1]
    s = jnp.einsum("nhqd,nhkd->nhqk", q, k) * mod.scale
    if attn_mask is not None:
        s = s + attn_mask
    p = jax.nn.softmax(s, axis=-1)
    ctx = jnp.einsum("nhqk,nhkd->nhqd", p, v).transpose(0, 2, 1, 3).reshape(N, S_q, E)
    return ctx @ mod.out_w + mod.out_b


# ----------------------------------- main ------------------------------------

if __name__ == "__main__":
    N, S_q, S_k, E, H = 2, 8, 16, 32, 4
    root = jax.random.PRNGKey(0)
    kq, kk_, kv_, kp1, kp2 = jax.random.split(root, 5)

    query = jax.random.normal(kq, (N, S_q, E), jnp.float32)
    key_in = jax.random.normal(kk_, (N, S_k, E), jnp.float32)
    value_in = jax.random.normal(kv_, (N, S_k, E), jnp.float32)
    # causal additive mask for the self-attention test (S_q, S_q)
    mask = jnp.where(
        jnp.arange(S_q)[None, :] > jnp.arange(S_q)[:, None], -1e9, 0.0
    ).astype(jnp.float32)

    # Cross-attention mode (module default self_attn=False), no mask.
    cross = MultiheadAttentionPallas(E, H, dropout=0.0, self_attn=False, rng=kp1)
    out_cross = cross(query, key_in, value_in, attn_mask=None)
    jax.block_until_ready(out_cross)
    ref_cross = reference(cross, query, key_in, value_in, attn_mask=None)

    # Self-attention mode with causal mask.
    slf = MultiheadAttentionPallas(E, H, dropout=0.0, self_attn=True, rng=kp2)
    out_self = slf(query, attn_mask=mask)
    jax.block_until_ready(out_self)
    ref_self = reference(slf, query, attn_mask=mask)

    assert out_cross.shape == (N, S_q, E)
    assert out_self.shape == (N, S_q, E)
    # Attention matmuls run with bf16 operands (f32 accumulate), so compare
    # against the f32 reference with a bf16-appropriate tolerance.
    assert jnp.allclose(out_cross, ref_cross, atol=5e-2, rtol=5e-2), \
        float(jnp.max(jnp.abs(out_cross - ref_cross)))
    assert jnp.allclose(out_self, ref_self, atol=5e-2, rtol=5e-2), \
        float(jnp.max(jnp.abs(out_self - ref_self)))

    print("KERNEL_OK")
</pallas_src>

<mosaic_0001>
module attributes {stable_mosaic.version = 11 : i64} {
  func.func @_fused_mha_kernel(%arg0: i32, %arg1: memref<1x8x32xf32, #tpu.memory_space<vmem>>, %arg2: memref<1x16x32xf32, #tpu.memory_space<vmem>>, %arg3: memref<4x8x32xf32, #tpu.memory_space<vmem>>, %arg4: memref<4x1x8xf32, #tpu.memory_space<vmem>>, %arg5: memref<4x8x32xf32, #tpu.memory_space<vmem>>, %arg6: memref<4x1x8xf32, #tpu.memory_space<vmem>>, %arg7: memref<4x8x32xf32, #tpu.memory_space<vmem>>, %arg8: memref<4x1x8xf32, #tpu.memory_space<vmem>>, %arg9: memref<4x8x32xf32, #tpu.memory_space<vmem>>, %arg10: memref<1x32xf32, #tpu.memory_space<vmem>>, %arg11: memref<1x8x32xf32, #tpu.memory_space<vmem>>) attributes {dimension_semantics = [#tpu.dimension_semantics<parallel>], iteration_bounds = array<i64: 2>, scalar_prefetch = 0 : i64, scratch_operands = 0 : i64, tpu.core_type = #tpu.core_type<tc>, window_params = [{transform_indices = @transform_0, window_bounds = array<i64: 1, 8, 32>}, {transform_indices = @transform_1, window_bounds = array<i64: 1, 16, 32>}, {pipeline_mode = #tpu.pipeline_mode<synchronous>, transform_indices = @transform_2, window_bounds = array<i64: 4, 8, 32>}, {pipeline_mode = #tpu.pipeline_mode<synchronous>, transform_indices = @transform_3, window_bounds = array<i64: 4, 1, 8>}, {pipeline_mode = #tpu.pipeline_mode<synchronous>, transform_indices = @transform_4, window_bounds = array<i64: 4, 8, 32>}, {pipeline_mode = #tpu.pipeline_mode<synchronous>, transform_indices = @transform_5, window_bounds = array<i64: 4, 1, 8>}, {pipeline_mode = #tpu.pipeline_mode<synchronous>, transform_indices = @transform_6, window_bounds = array<i64: 4, 8, 32>}, {pipeline_mode = #tpu.pipeline_mode<synchronous>, transform_indices = @transform_7, window_bounds = array<i64: 4, 1, 8>}, {pipeline_mode = #tpu.pipeline_mode<synchronous>, transform_indices = @transform_8, window_bounds = array<i64: 4, 8, 32>}, {pipeline_mode = #tpu.pipeline_mode<synchronous>, transform_indices = @transform_9, window_bounds = array<i64: 1, 32>}, {transform_indices = @transform_10, window_bounds = array<i64: 1, 8, 32>}]} {
    %c0 = arith.constant 0 : index
    %c0_0 = arith.constant 0 : index
    %c0_1 = arith.constant 0 : index
    %0 = vector.load %arg1[%c0, %c0_0, %c0_1] : memref<1x8x32xf32, #tpu.memory_space<vmem>>, vector<1x8x32xf32>
    %1 = vector.shape_cast %0 : vector<1x8x32xf32> to vector<8x32xf32>
    %c0_2 = arith.constant 0 : index
    %c0_3 = arith.constant 0 : index
    %c0_4 = arith.constant 0 : index
    %2 = vector.load %arg2[%c0_2, %c0_3, %c0_4] : memref<1x16x32xf32, #tpu.memory_space<vmem>>, vector<1x16x32xf32>
    %3 = vector.shape_cast %2 : vector<1x16x32xf32> to vector<16x32xf32>
    %c0_5 = arith.constant 0 : index
    %c0_6 = arith.constant 0 : index
    %4 = vector.load %arg10[%c0_5, %c0_6] : memref<1x32xf32, #tpu.memory_space<vmem>>, vector<1x32xf32>
    %5 = vector.shape_cast %4 : vector<1x32xf32> to vector<1x32xf32>
    %6 = vector.broadcast %5 : vector<1x32xf32> to vector<8x32xf32>
    %c0_7 = arith.constant 0 : index
    %c0_8 = arith.constant 0 : index
    %c0_9 = arith.constant 0 : index
    %7 = vector.load %arg3[%c0_7, %c0_8, %c0_9] : memref<4x8x32xf32, #tpu.memory_space<vmem>>, vector<1x8x32xf32>
    %8 = vector.shape_cast %7 : vector<1x8x32xf32> to vector<8x32xf32>
    %cst = arith.constant dense<0.000000e+00> : vector<8x8xf32>
    %9 = tpu.matmul %1, %8, %cst {dimension_numbers = #tpu.dot_dimension_numbers<[1], [1], [0], [0], [0, 0, 1, 0], [], []>} : vector<8x32xf32>, vector<8x32xf32>, vector<8x8xf32> -> vector<8x8xf32>
    %c0_10 = arith.constant 0 : index
    %c0_11 = arith.constant 0 : index
    %c0_12 = arith.constant 0 : index
    %10 = vector.load %arg4[%c0_10, %c0_11, %c0_12] : memref<4x1x8xf32, #tpu.memory_space<vmem>>, vector<1x1x8xf32>
    %11 = vector.shape_cast %10 : vector<1x1x8xf32> to vector<1x8xf32>
    %12 = vector.broadcast %11 : vector<1x8xf32> to vector<8x8xf32>
    %13 = arith.addf %9, %12 : vector<8x8xf32>
    %c0_13 = arith.constant 0 : index
    %c0_14 = arith.constant 0 : index
    %c0_15 = arith.constant 0 : index
    %14 = vector.load %arg5[%c0_13, %c0_14, %c0_15] : memref<4x8x32xf32, #tpu.memory_space<vmem>>, vector<1x8x32xf32>
    %15 = vector.shape_cast %14 : vector<1x8x32xf32> to vector<8x32xf32>
    %cst_16 = arith.constant dense<0.000000e+00> : vector<16x8xf32>
    %16 = tpu.matmul %3, %15, %cst_16 {dimension_numbers = #tpu.dot_dimension_numbers<[1], [1], [0], [0], [0, 0, 1, 0], [], []>} : vector<16x32xf32>, vector<8x32xf32>, vector<16x8xf32> -> vector<16x8xf32>
    %c0_17 = arith.constant 0 : index
    %c0_18 = arith.constant 0 : index
    %c0_19 = arith.constant 0 : index
    %17 = vector.load %arg6[%c0_17, %c0_18, %c0_19] : memref<4x1x8xf32, #tpu.memory_space<vmem>>, vector<1x1x8xf32>
    %18 = vector.shape_cast %17 : vector<1x1x8xf32> to vector<1x8xf32>
    %19 = vector.broadcast %18 : vector<1x8xf32> to vector<16x8xf32>
    %20 = arith.addf %16, %19 : vector<16x8xf32>
    %c0_20 = arith.constant 0 : index
    %c0_21 = arith.constant 0 : index
    %c0_22 = arith.constant 0 : index
    %21 = vector.load %arg7[%c0_20, %c0_21, %c0_22] : memref<4x8x32xf32, #tpu.memory_space<vmem>>, vector<1x8x32xf32>
    %22 = vector.shape_cast %21 : vector<1x8x32xf32> to vector<8x32xf32>
    %cst_23 = arith.constant dense<0.000000e+00> : vector<16x8xf32>
    %23 = tpu.matmul %3, %22, %cst_23 {dimension_numbers = #tpu.dot_dimension_numbers<[1], [1], [0], [0], [0, 0, 1, 0], [], []>} : vector<16x32xf32>, vector<8x32xf32>, vector<16x8xf32> -> vector<16x8xf32>
    %c0_24 = arith.constant 0 : index
    %c0_25 = arith.constant 0 : index
    %c0_26 = arith.constant 0 : index
    %24 = vector.load %arg8[%c0_24, %c0_25, %c0_26] : memref<4x1x8xf32, #tpu.memory_space<vmem>>, vector<1x1x8xf32>
    %25 = vector.shape_cast %24 : vector<1x1x8xf32> to vector<1x8xf32>
    %26 = vector.broadcast %25 : vector<1x8xf32> to vector<16x8xf32>
    %27 = arith.addf %23, %26 : vector<16x8xf32>
    %28 = arith.truncf %13 : vector<8x8xf32> to vector<8x8xbf16>
    %29 = arith.truncf %20 : vector<16x8xf32> to vector<16x8xbf16>
    %cst_27 = arith.constant dense<0.000000e+00> : vector<8x16xf32>
    %30 = tpu.matmul %28, %29, %cst_27 {dimension_numbers = #tpu.dot_dimension_numbers<[1], [1], [0], [0], [0, 0, 1, 0], [], []>} : vector<8x8xbf16>, vector<16x8xbf16>, vector<8x16xf32> -> vector<8x16xf32>
    %cst_28 = arith.constant 0.353553385 : f32
    %31 = vector.broadcast %cst_28 : f32 to vector<8x16xf32>
    %32 = arith.mulf %30, %31 : vector<8x16xf32>
    %cst_29 = arith.constant dense<0xFF800000> : vector<8xf32>
    %33 = vector.multi_reduction <maximumf>, %32, %cst_29 [1] : vector<8x16xf32> to vector<8xf32>
    %34 = vector.shape_cast %33 : vector<8xf32> to vector<8x1xf32>
    %35 = vector.broadcast %34 : vector<8x1xf32> to vector<8x16xf32>
    %36 = arith.subf %32, %35 : vector<8x16xf32>
    %37 = math.exp %36 : vector<8x16xf32>
    %cst_30 = arith.constant dense<0.000000e+00> : vector<8xf32>
    %38 = vector.multi_reduction <add>, %37, %cst_30 [1] : vector<8x16xf32> to vector<8xf32>
    %39 = vector.shape_cast %38 : vector<8xf32> to vector<8x1xf32>
    %40 = tpu.reciprocal %39 {approx = true} : vector<8x1xf32> -> vector<8x1xf32>
    %41 = vector.broadcast %40 : vector<8x1xf32> to vector<8x16xf32>
    %42 = arith.mulf %37, %41 : vector<8x16xf32>
    %43 = arith.truncf %42 : vector<8x16xf32> to vector<8x16xbf16>
    %44 = arith.truncf %27 : vector<16x8xf32> to vector<16x8xbf16>
    %cst_31 = arith.constant dense<0.000000e+00> : vector<8x8xf32>
    %45 = tpu.matmul %43, %44, %cst_31 {dimension_numbers = #tpu.dot_dimension_numbers<[1], [0], [0], [1], [0, 0, 1, 1], [], []>} : vector<8x16xbf16>, vector<16x8xbf16>, vector<8x8xf32> -> vector<8x8xf32>
    %c0_32 = arith.constant 0 : index
    %c0_33 = arith.constant 0 : index
    %c0_34 = arith.constant 0 : index
    %46 = vector.load %arg9[%c0_32, %c0_33, %c0_34] : memref<4x8x32xf32, #tpu.memory_space<vmem>>, vector<1x8x32xf32>
    %47 = vector.shape_cast %46 : vector<1x8x32xf32> to vector<8x32xf32>
    %cst_35 = arith.constant dense<0.000000e+00> : vector<8x32xf32>
    %48 = tpu.matmul %45, %47, %cst_35 {dimension_numbers = #tpu.dot_dimension_numbers<[1], [0], [0], [1], [0, 0, 1, 1], [], []>} : vector<8x8xf32>, vector<8x32xf32>, vector<8x32xf32> -> vector<8x32xf32>
    %49 = arith.addf %6, %48 : vector<8x32xf32>
    %c1 = arith.constant 1 : index
    %c0_36 = arith.constant 0 : index
    %c0_37 = arith.constant 0 : index
    %50 = vector.load %arg3[%c1, %c0_36, %c0_37] : memref<4x8x32xf32, #tpu.memory_space<vmem>>, vector<1x8x32xf32>
    %51 = vector.shape_cast %50 : vector<1x8x32xf32> to vector<8x32xf32>
    %cst_38 = arith.constant dense<0.000000e+00> : vector<8x8xf32>
    %52 = tpu.matmul %1, %51, %cst_38 {dimension_numbers = #tpu.dot_dimension_numbers<[1], [1], [0], [0], [0, 0, 1, 0], [], []>} : vector<8x32xf32>, vector<8x32xf32>, vector<8x8xf32> -> vector<8x8xf32>
    %c1_39 = arith.constant 1 : index
    %c0_40 = arith.constant 0 : index
    %c0_41 = arith.constant 0 : index
    %53 = vector.load %arg4[%c1_39, %c0_40, %c0_41] : memref<4x1x8xf32, #tpu.memory_space<vmem>>, vector<1x1x8xf32>
    %54 = vector.shape_cast %53 : vector<1x1x8xf32> to vector<1x8xf32>
    %55 = vector.broadcast %54 : vector<1x8xf32> to vector<8x8xf32>
    %56 = arith.addf %52, %55 : vector<8x8xf32>
    %c1_42 = arith.constant 1 : index
    %c0_43 = arith.constant 0 : index
    %c0_44 = arith.constant 0 : index
    %57 = vector.load %arg5[%c1_42, %c0_43, %c0_44] : memref<4x8x32xf32, #tpu.memory_space<vmem>>, vector<1x8x32xf32>
    %58 = vector.shape_cast %57 : vector<1x8x32xf32> to vector<8x32xf32>
    %cst_45 = arith.constant dense<0.000000e+00> : vector<16x8xf32>
    %59 = tpu.matmul %3, %58, %cst_45 {dimension_numbers = #tpu.dot_dimension_numbers<[1], [1], [0], [0], [0, 0, 1, 0], [], []>} : vector<16x32xf32>, vector<8x32xf32>, vector<16x8xf32> -> vector<16x8xf32>
    %c1_46 = arith.constant 1 : index
    %c0_47 = arith.constant 0 : index
    %c0_48 = arith.constant 0 : index
    %60 = vector.load %arg6[%c1_46, %c0_47, %c0_48] : memref<4x1x8xf32, #tpu.memory_space<vmem>>, vector<1x1x8xf32>
    %61 = vector.shape_cast %60 : vector<1x1x8xf32> to vector<1x8xf32>
    %62 = vector.broadcast %61 : vector<1x8xf32> to vector<16x8xf32>
    %63 = arith.addf %59, %62 : vector<16x8xf32>
    %c1_49 = arith.constant 1 : index
    %c0_50 = arith.constant 0 : index
    %c0_51 = arith.constant 0 : index
    %64 = vector.load %arg7[%c1_49, %c0_50, %c0_51] : memref<4x8x32xf32, #tpu.memory_space<vmem>>, vector<1x8x32xf32>
    %65 = vector.shape_cast %64 : vector<1x8x32xf32> to vector<8x32xf32>
    %cst_52 = arith.constant dense<0.000000e+00> : vector<16x8xf32>
    %66 = tpu.matmul %3, %65, %cst_52 {dimension_numbers = #tpu.dot_dimension_numbers<[1], [1], [0], [0], [0, 0, 1, 0], [], []>} : vector<16x32xf32>, vector<8x32xf32>, vector<16x8xf32> -> vector<16x8xf32>
    %c1_53 = arith.constant 1 : index
    %c0_54 = arith.constant 0 : index
    %c0_55 = arith.constant 0 : index
    %67 = vector.load %arg8[%c1_53, %c0_54, %c0_55] : memref<4x1x8xf32, #tpu.memory_space<vmem>>, vector<1x1x8xf32>
    %68 = vector.shape_cast %67 : vector<1x1x8xf32> to vector<1x8xf32>
    %69 = vector.broadcast %68 : vector<1x8xf32> to vector<16x8xf32>
    %70 = arith.addf %66, %69 : vector<16x8xf32>
    %71 = arith.truncf %56 : vector<8x8xf32> to vector<8x8xbf16>
    %72 = arith.truncf %63 : vector<16x8xf32> to vector<16x8xbf16>
    %cst_56 = arith.constant dense<0.000000e+00> : vector<8x16xf32>
    %73 = tpu.matmul %71, %72, %cst_56 {dimension_numbers = #tpu.dot_dimension_numbers<[1], [1], [0], [0], [0, 0, 1, 0], [], []>} : vector<8x8xbf16>, vector<16x8xbf16>, vector<8x16xf32> -> vector<8x16xf32>
    %cst_57 = arith.constant 0.353553385 : f32
    %74 = vector.broadcast %cst_57 : f32 to vector<8x16xf32>
    %75 = arith.mulf %73, %74 : vector<8x16xf32>
    %cst_58 = arith.constant dense<0xFF800000> : vector<8xf32>
    %76 = vector.multi_reduction <maximumf>, %75, %cst_58 [1] : vector<8x16xf32> to vector<8xf32>
    %77 = vector.shape_cast %76 : vector<8xf32> to vector<8x1xf32>
    %78 = vector.broadcast %77 : vector<8x1xf32> to vector<8x16xf32>
    %79 = arith.subf %75, %78 : vector<8x16xf32>
    %80 = math.exp %79 : vector<8x16xf32>
    %cst_59 = arith.constant dense<0.000000e+00> : vector<8xf32>
    %81 = vector.multi_reduction <add>, %80, %cst_59 [1] : vector<8x16xf32> to vector<8xf32>
    %82 = vector.shape_cast %81 : vector<8xf32> to vector<8x1xf32>
    %83 = tpu.reciprocal %82 {approx = true} : vector<8x1xf32> -> vector<8x1xf32>
    %84 = vector.broadcast %83 : vector<8x1xf32> to vector<8x16xf32>
    %85 = arith.mulf %80, %84 : vector<8x16xf32>
    %86 = arith.truncf %85 : vector<8x16xf32> to vector<8x16xbf16>
    %87 = arith.truncf %70 : vector<16x8xf32> to vector<16x8xbf16>
    %cst_60 = arith.constant dense<0.000000e+00> : vector<8x8xf32>
    %88 = tpu.matmul %86, %87, %cst_60 {dimension_numbers = #tpu.dot_dimension_numbers<[1], [0], [0], [1], [0, 0, 1, 1], [], []>} : vector<8x16xbf16>, vector<16x8xbf16>, vector<8x8xf32> -> vector<8x8xf32>
    %c1_61 = arith.constant 1 : index
    %c0_62 = arith.constant 0 : index
    %c0_63 = arith.constant 0 : index
    %89 = vector.load %arg9[%c1_61, %c0_62, %c0_63] : memref<4x8x32xf32, #tpu.memory_space<vmem>>, vector<1x8x32xf32>
    %90 = vector.shape_cast %89 : vector<1x8x32xf32> to vector<8x32xf32>
    %cst_64 = arith.constant dense<0.000000e+00> : vector<8x32xf32>
    %91 = tpu.matmul %88, %90, %cst_64 {dimension_numbers = #tpu.dot_dimension_numbers<[1], [0], [0], [1], [0, 0, 1, 1], [], []>} : vector<8x8xf32>, vector<8x32xf32>, vector<8x32xf32> -> vector<8x32xf32>
    %92 = arith.addf %49, %91 : vector<8x32xf32>
    %c2 = arith.constant 2 : index
    %c0_65 = arith.constant 0 : index
    %c0_66 = arith.constant 0 : index
    %93 = vector.load %arg3[%c2, %c0_65, %c0_66] : memref<4x8x32xf32, #tpu.memory_space<vmem>>, vector<1x8x32xf32>
    %94 = vector.shape_cast %93 : vector<1x8x32xf32> to vector<8x32xf32>
    %cst_67 = arith.constant dense<0.000000e+00> : vector<8x8xf32>
    %95 = tpu.matmul %1, %94, %cst_67 {dimension_numbers = #tpu.dot_dimension_numbers<[1], [1], [0], [0], [0, 0, 1, 0], [], []>} : vector<8x32xf32>, vector<8x32xf32>, vector<8x8xf32> -> vector<8x8xf32>
    %c2_68 = arith.constant 2 : index
    %c0_69 = arith.constant 0 : index
    %c0_70 = arith.constant 0 : index
    %96 = vector.load %arg4[%c2_68, %c0_69, %c0_70] : memref<4x1x8xf32, #tpu.memory_space<vmem>>, vector<1x1x8xf32>
    %97 = vector.shape_cast %96 : vector<1x1x8xf32> to vector<1x8xf32>
    %98 = vector.broadcast %97 : vector<1x8xf32> to vector<8x8xf32>
    %99 = arith.addf %95, %98 : vector<8x8xf32>
    %c2_71 = arith.constant 2 : index
    %c0_72 = arith.constant 0 : index
    %c0_73 = arith.constant 0 : index
    %100 = vector.load %arg5[%c2_71, %c0_72, %c0_73] : memref<4x8x32xf32, #tpu.memory_space<vmem>>, vector<1x8x32xf32>
    %101 = vector.shape_cast %100 : vector<1x8x32xf32> to vector<8x32xf32>
    %cst_74 = arith.constant dense<0.000000e+00> : vector<16x8xf32>
    %102 = tpu.matmul %3, %101, %cst_74 {dimension_numbers = #tpu.dot_dimension_numbers<[1], [1], [0], [0], [0, 0, 1, 0], [], []>} : vector<16x32xf32>, vector<8x32xf32>, vector<16x8xf32> -> vector<16x8xf32>
    %c2_75 = arith.constant 2 : index
    %c0_76 = arith.constant 0 : index
    %c0_77 = arith.constant 0 : index
    %103 = vector.load %arg6[%c2_75, %c0_76, %c0_77] : memref<4x1x8xf32, #tpu.memory_space<vmem>>, vector<1x1x8xf32>
    %104 = vector.shape_cast %103 : vector<1x1x8xf32> to vector<1x8xf32>
    %105 = vector.broadcast %104 : vector<1x8xf32> to vector<16x8xf32>
    %106 = arith.addf %102, %105 : vector<16x8xf32>
    %c2_78 = arith.constant 2 : index
    %c0_79 = arith.constant 0 : index
    %c0_80 = arith.constant 0 : index
    %107 = vector.load %arg7[%c2_78, %c0_79, %c0_80] : memref<4x8x32xf32, #tpu.memory_space<vmem>>, vector<1x8x32xf32>
    %108 = vector.shape_cast %107 : vector<1x8x32xf32> to vector<8x32xf32>
    %cst_81 = arith.constant dense<0.000000e+00> : vector<16x8xf32>
    %109 = tpu.matmul %3, %108, %cst_81 {dimension_numbers = #tpu.dot_dimension_numbers<[1], [1], [0], [0], [0, 0, 1, 0], [], []>} : vector<16x32xf32>, vector<8x32xf32>, vector<16x8xf32> -> vector<16x8xf32>
    %c2_82 = arith.constant 2 : index
    %c0_83 = arith.constant 0 : index
    %c0_84 = arith.constant 0 : index
    %110 = vector.load %arg8[%c2_82, %c0_83, %c0_84] : memref<4x1x8xf32, #tpu.memory_space<vmem>>, vector<1x1x8xf32>
    %111 = vector.shape_cast %110 : vector<1x1x8xf32> to vector<1x8xf32>
    %112 = vector.broadcast %111 : vector<1x8xf32> to vector<16x8xf32>
    %113 = arith.addf %109, %112 : vector<16x8xf32>
    %114 = arith.truncf %99 : vector<8x8xf32> to vector<8x8xbf16>
    %115 = arith.truncf %106 : vector<16x8xf32> to vector<16x8xbf16>
    %cst_85 = arith.constant dense<0.000000e+00> : vector<8x16xf32>
    %116 = tpu.matmul %114, %115, %cst_85 {dimension_numbers = #tpu.dot_dimension_numbers<[1], [1], [0], [0], [0, 0, 1, 0], [], []>} : vector<8x8xbf16>, vector<16x8xbf16>, vector<8x16xf32> -> vector<8x16xf32>
    %cst_86 = arith.constant 0.353553385 : f32
    %117 = vector.broadcast %cst_86 : f32 to vector<8x16xf32>
    %118 = arith.mulf %116, %117 : vector<8x16xf32>
    %cst_87 = arith.constant dense<0xFF800000> : vector<8xf32>
    %119 = vector.multi_reduction <maximumf>, %118, %cst_87 [1] : vector<8x16xf32> to vector<8xf32>
    %120 = vector.shape_cast %119 : vector<8xf32> to vector<8x1xf32>
    %121 = vector.broadcast %120 : vector<8x1xf32> to vector<8x16xf32>
    %122 = arith.subf %118, %121 : vector<8x16xf32>
    %123 = math.exp %122 : vector<8x16xf32>
    %cst_88 = arith.constant dense<0.000000e+00> : vector<8xf32>
    %124 = vector.multi_reduction <add>, %123, %cst_88 [1] : vector<8x16xf32> to vector<8xf32>
    %125 = vector.shape_cast %124 : vector<8xf32> to vector<8x1xf32>
    %126 = tpu.reciprocal %125 {approx = true} : vector<8x1xf32> -> vector<8x1xf32>
    %127 = vector.broadcast %126 : vector<8x1xf32> to vector<8x16xf32>
    %128 = arith.mulf %123, %127 : vector<8x16xf32>
    %129 = arith.truncf %128 : vector<8x16xf32> to vector<8x16xbf16>
    %130 = arith.truncf %113 : vector<16x8xf32> to vector<16x8xbf16>
    %cst_89 = arith.constant dense<0.000000e+00> : vector<8x8xf32>
    %131 = tpu.matmul %129, %130, %cst_89 {dimension_numbers = #tpu.dot_dimension_numbers<[1], [0], [0], [1], [0, 0, 1, 1], [], []>} : vector<8x16xbf16>, vector<16x8xbf16>, vector<8x8xf32> -> vector<8x8xf32>
    %c2_90 = arith.constant 2 : index
    %c0_91 = arith.constant 0 : index
    %c0_92 = arith.constant 0 : index
    %132 = vector.load %arg9[%c2_90, %c0_91, %c0_92] : memref<4x8x32xf32, #tpu.memory_space<vmem>>, vector<1x8x32xf32>
    %133 = vector.shape_cast %132 : vector<1x8x32xf32> to vector<8x32xf32>
    %cst_93 = arith.constant dense<0.000000e+00> : vector<8x32xf32>
    %134 = tpu.matmul %131, %133, %cst_93 {dimension_numbers = #tpu.dot_dimension_numbers<[1], [0], [0], [1], [0, 0, 1, 1], [], []>} : vector<8x8xf32>, vector<8x32xf32>, vector<8x32xf32> -> vector<8x32xf32>
    %135 = arith.addf %92, %134 : vector<8x32xf32>
    %c3 = arith.constant 3 : index
    %c0_94 = arith.constant 0 : index
    %c0_95 = arith.constant 0 : index
    %136 = vector.load %arg3[%c3, %c0_94, %c0_95] : memref<4x8x32xf32, #tpu.memory_space<vmem>>, vector<1x8x32xf32>
    %137 = vector.shape_cast %136 : vector<1x8x32xf32> to vector<8x32xf32>
    %cst_96 = arith.constant dense<0.000000e+00> : vector<8x8xf32>
    %138 = tpu.matmul %1, %137, %cst_96 {dimension_numbers = #tpu.dot_dimension_numbers<[1], [1], [0], [0], [0, 0, 1, 0], [], []>} : vector<8x32xf32>, vector<8x32xf32>, vector<8x8xf32> -> vector<8x8xf32>
    %c3_97 = arith.constant 3 : index
    %c0_98 = arith.constant 0 : index
    %c0_99 = arith.constant 0 : index
    %139 = vector.load %arg4[%c3_97, %c0_98, %c0_99] : memref<4x1x8xf32, #tpu.memory_space<vmem>>, vector<1x1x8xf32>
    %140 = vector.shape_cast %139 : vector<1x1x8xf32> to vector<1x8xf32>
    %141 = vector.broadcast %140 : vector<1x8xf32> to vector<8x8xf32>
    %142 = arith.addf %138, %141 : vector<8x8xf32>
    %c3_100 = arith.constant 3 : index
    %c0_101 = arith.constant 0 : index
    %c0_102 = arith.constant 0 : index
    %143 = vector.load %arg5[%c3_100, %c0_101, %c0_102] : memref<4x8x32xf32, #tpu.memory_space<vmem>>, vector<1x8x32xf32>
    %144 = vector.shape_cast %143 : vector<1x8x32xf32> to vector<8x32xf32>
    %cst_103 = arith.constant dense<0.000000e+00> : vector<16x8xf32>
    %145 = tpu.matmul %3, %144, %cst_103 {dimension_numbers = #tpu.dot_dimension_numbers<[1], [1], [0], [0], [0, 0, 1, 0], [], []>} : vector<16x32xf32>, vector<8x32xf32>, vector<16x8xf32> -> vector<16x8xf32>
    %c3_104 = arith.constant 3 : index
    %c0_105 = arith.constant 0 : index
    %c0_106 = arith.constant 0 : index
    %146 = vector.load %arg6[%c3_104, %c0_105, %c0_106] : memref<4x1x8xf32, #tpu.memory_space<vmem>>, vector<1x1x8xf32>
    %147 = vector.shape_cast %146 : vector<1x1x8xf32> to vector<1x8xf32>
    %148 = vector.broadcast %147 : vector<1x8xf32> to vector<16x8xf32>
    %149 = arith.addf %145, %148 : vector<16x8xf32>
    %c3_107 = arith.constant 3 : index
    %c0_108 = arith.constant 0 : index
    %c0_109 = arith.constant 0 : index
    %150 = vector.load %arg7[%c3_107, %c0_108, %c0_109] : memref<4x8x32xf32, #tpu.memory_space<vmem>>, vector<1x8x32xf32>
    %151 = vector.shape_cast %150 : vector<1x8x32xf32> to vector<8x32xf32>
    %cst_110 = arith.constant dense<0.000000e+00> : vector<16x8xf32>
    %152 = tpu.matmul %3, %151, %cst_110 {dimension_numbers = #tpu.dot_dimension_numbers<[1], [1], [0], [0], [0, 0, 1, 0], [], []>} : vector<16x32xf32>, vector<8x32xf32>, vector<16x8xf32> -> vector<16x8xf32>
    %c3_111 = arith.constant 3 : index
    %c0_112 = arith.constant 0 : index
    %c0_113 = arith.constant 0 : index
    %153 = vector.load %arg8[%c3_111, %c0_112, %c0_113] : memref<4x1x8xf32, #tpu.memory_space<vmem>>, vector<1x1x8xf32>
    %154 = vector.shape_cast %153 : vector<1x1x8xf32> to vector<1x8xf32>
    %155 = vector.broadcast %154 : vector<1x8xf32> to vector<16x8xf32>
    %156 = arith.addf %152, %155 : vector<16x8xf32>
    %157 = arith.truncf %142 : vector<8x8xf32> to vector<8x8xbf16>
    %158 = arith.truncf %149 : vector<16x8xf32> to vector<16x8xbf16>
    %cst_114 = arith.constant dense<0.000000e+00> : vector<8x16xf32>
    %159 = tpu.matmul %157, %158, %cst_114 {dimension_numbers = #tpu.dot_dimension_numbers<[1], [1], [0], [0], [0, 0, 1, 0], [], []>} : vector<8x8xbf16>, vector<16x8xbf16>, vector<8x16xf32> -> vector<8x16xf32>
    %cst_115 = arith.constant 0.353553385 : f32
    %160 = vector.broadcast %cst_115 : f32 to vector<8x16xf32>
    %161 = arith.mulf %159, %160 : vector<8x16xf32>
    %cst_116 = arith.constant dense<0xFF800000> : vector<8xf32>
    %162 = vector.multi_reduction <maximumf>, %161, %cst_116 [1] : vector<8x16xf32> to vector<8xf32>
    %163 = vector.shape_cast %162 : vector<8xf32> to vector<8x1xf32>
    %164 = vector.broadcast %163 : vector<8x1xf32> to vector<8x16xf32>
    %165 = arith.subf %161, %164 : vector<8x16xf32>
    %166 = math.exp %165 : vector<8x16xf32>
    %cst_117 = arith.constant dense<0.000000e+00> : vector<8xf32>
    %167 = vector.multi_reduction <add>, %166, %cst_117 [1] : vector<8x16xf32> to vector<8xf32>
    %168 = vector.shape_cast %167 : vector<8xf32> to vector<8x1xf32>
    %169 = tpu.reciprocal %168 {approx = true} : vector<8x1xf32> -> vector<8x1xf32>
    %170 = vector.broadcast %169 : vector<8x1xf32> to vector<8x16xf32>
    %171 = arith.mulf %166, %170 : vector<8x16xf32>
    %172 = arith.truncf %171 : vector<8x16xf32> to vector<8x16xbf16>
    %173 = arith.truncf %156 : vector<16x8xf32> to vector<16x8xbf16>
    %cst_118 = arith.constant dense<0.000000e+00> : vector<8x8xf32>
    %174 = tpu.matmul %172, %173, %cst_118 {dimension_numbers = #tpu.dot_dimension_numbers<[1], [0], [0], [1], [0, 0, 1, 1], [], []>} : vector<8x16xbf16>, vector<16x8xbf16>, vector<8x8xf32> -> vector<8x8xf32>
    %c3_119 = arith.constant 3 : index
    %c0_120 = arith.constant 0 : index
    %c0_121 = arith.constant 0 : index
    %175 = vector.load %arg9[%c3_119, %c0_120, %c0_121] : memref<4x8x32xf32, #tpu.memory_space<vmem>>, vector<1x8x32xf32>
    %176 = vector.shape_cast %175 : vector<1x8x32xf32> to vector<8x32xf32>
    %cst_122 = arith.constant dense<0.000000e+00> : vector<8x32xf32>
    %177 = tpu.matmul %174, %176, %cst_122 {dimension_numbers = #tpu.dot_dimension_numbers<[1], [0], [0], [1], [0, 0, 1, 1], [], []>} : vector<8x8xf32>, vector<8x32xf32>, vector<8x32xf32> -> vector<8x32xf32>
    %178 = arith.addf %135, %177 : vector<8x32xf32>
    %c0_123 = arith.constant 0 : index
    %c0_124 = arith.constant 0 : index
    %c0_125 = arith.constant 0 : index
    %179 = vector.load %arg11[%c0_123, %c0_124, %c0_125] : memref<1x8x32xf32, #tpu.memory_space<vmem>>, vector<1x8x32xf32>
    %180 = vector.shape_cast %179 : vector<1x8x32xf32> to vector<8x32xf32>
    %181 = vector.shape_cast %178 : vector<8x32xf32> to vector<1x8x32xf32>
    tpu.vector_store %arg11[%c0_123, %c0_124, %c0_125], %181 {strides = array<i32>} : memref<1x8x32xf32, #tpu.memory_space<vmem>>, vector<1x8x32xf32>,
    return
  }
  func.func @transform_0(%arg0: i32) -> (i32, i32, i32) {
    %c0_i32 = arith.constant 0 : i32
    %c0_i32_0 = arith.constant 0 : i32
    %c0_i32_1 = arith.constant 0 : i32
    return %arg0, %c0_i32, %c0_i32_0 : i32, i32, i32
  }
  func.func @transform_1(%arg0: i32) -> (i32, i32, i32) {
    %c0_i32 = arith.constant 0 : i32
    %c0_i32_0 = arith.constant 0 : i32
    %c0_i32_1 = arith.constant 0 : i32
    return %arg0, %c0_i32, %c0_i32_0 : i32, i32, i32
  }
  func.func @transform_2(%arg0: i32) -> (i32, i32, i32) {
    %c0_i32 = arith.constant 0 : i32
    %c0_i32_0 = arith.constant 0 : i32
    %c0_i32_1 = arith.constant 0 : i32
    %c0_i32_2 = arith.constant 0 : i32
    return %c0_i32, %c0_i32_0, %c0_i32_1 : i32, i32, i32
  }
  func.func @transform_3(%arg0: i32) -> (i32, i32, i32) {
    %c0_i32 = arith.constant 0 : i32
    %c0_i32_0 = arith.constant 0 : i32
    %c0_i32_1 = arith.constant 0 : i32
    %c0_i32_2 = arith.constant 0 : i32
    return %c0_i32, %c0_i32_0, %c0_i32_1 : i32, i32, i32
  }
  func.func @transform_4(%arg0: i32) -> (i32, i32, i32) {
    %c0_i32 = arith.constant 0 : i32
    %c0_i32_0 = arith.constant 0 : i32
    %c0_i32_1 = arith.constant 0 : i32
    %c0_i32_2 = arith.constant 0 : i32
    return %c0_i32, %c0_i32_0, %c0_i32_1 : i32, i32, i32
  }
  func.func @transform_5(%arg0: i32) -> (i32, i32, i32) {
    %c0_i32 = arith.constant 0 : i32
    %c0_i32_0 = arith.constant 0 : i32
    %c0_i32_1 = arith.constant 0 : i32
    %c0_i32_2 = arith.constant 0 : i32
    return %c0_i32, %c0_i32_0, %c0_i32_1 : i32, i32, i32
  }
  func.func @transform_6(%arg0: i32) -> (i32, i32, i32) {
    %c0_i32 = arith.constant 0 : i32
    %c0_i32_0 = arith.constant 0 : i32
    %c0_i32_1 = arith.constant 0 : i32
    %c0_i32_2 = arith.constant 0 : i32
    return %c0_i32, %c0_i32_0, %c0_i32_1 : i32, i32, i32
  }
  func.func @transform_7(%arg0: i32) -> (i32, i32, i32) {
    %c0_i32 = arith.constant 0 : i32
    %c0_i32_0 = arith.constant 0 : i32
    %c0_i32_1 = arith.constant 0 : i32
    %c0_i32_2 = arith.constant 0 : i32
    return %c0_i32, %c0_i32_0, %c0_i32_1 : i32, i32, i32
  }
  func.func @transform_8(%arg0: i32) -> (i32, i32, i32) {
    %c0_i32 = arith.constant 0 : i32
    %c0_i32_0 = arith.constant 0 : i32
    %c0_i32_1 = arith.constant 0 : i32
    %c0_i32_2 = arith.constant 0 : i32
    return %c0_i32, %c0_i32_0, %c0_i32_1 : i32, i32, i32
  }
  func.func @transform_9(%arg0: i32) -> (i32, i32) {
    %c0_i32 = arith.constant 0 : i32
    %c0_i32_0 = arith.constant 0 : i32
    %c0_i32_1 = arith.constant 0 : i32
    return %c0_i32, %c0_i32_0 : i32, i32
  }
  func.func @transform_10(%arg0: i32) -> (i32, i32, i32) {
    %c0_i32 = arith.constant 0 : i32
    %c0_i32_0 = arith.constant 0 : i32
    %c0_i32_1 = arith.constant 0 : i32
    return %arg0, %c0_i32, %c0_i32_0 : i32, i32, i32
  }
}

</mosaic_0001>

<bundles_post_ra>
// kernel: tpu_custom_call.1
= control target key start
LH: loop header
LB: loop body
LE: loop exit
PB: predicated region body
PF: predicated region fallthrough
CT: control target
= control target key end

     0   :  { %s3642_s0 = inlined_call_operand.hbm [shape: f32[2,8,32], index: 0, kind: input, shape index: {}]   ;;  %s3643_s1 = inlined_call_operand.hbm [shape: f32[2,16,32], index: 1, kind: input, shape index: {}]   ;;  %s3644_s2 = inlined_call_operand.hbm [shape: f32[4,8,32], index: 2, kind: input, shape index: {}]   ;;  %s3645_s3 = inlined_call_operand.vmem [shape: f32[4,1,8], index: 3, kind: input, shape index: {}]   ;;  %s3646_s4 = inlined_call_operand.hbm [shape: f32[4,8,32], index: 4, kind: input, shape index: {}]   ;;  %s3647_s5 = inlined_call_operand.vmem [shape: f32[4,1,8], index: 5, kind: input, shape index: {}]   ;;  %s3648_s6 = inlined_call_operand.hbm [shape: f32[4,8,32], index: 6, kind: input, shape index: {}]   ;;  %s3649_s7 = inlined_call_operand.vmem [shape: f32[4,1,8], index: 7, kind: input, shape index: {}]   ;;  %s3650_s8 = inlined_call_operand.hbm [shape: f32[4,8,32], index: 8, kind: input, shape index: {}]   ;;  %s3651_s9 = inlined_call_operand.vmem [shape: f32[1,32], index: 9, kind: input, shape index: {}]   ;;  %s3652_s10 = inlined_call_operand.hbm [shape: f32[2,8,32], index: 10, kind: output, shape index: {}]  }
   0x1   :  { %3659 = sst [smem:[#allocation20_spill]] %s3642_s0 }
   0x2   :  { %3660 = sst [smem:[#allocation21_spill]] %s3644_s2 }
   0x3   :  { %3661 = sst [smem:[#allocation22_spill]] %s3646_s4 }
   0x4   :  { %3662 = sst [smem:[#allocation23_spill]] %s3648_s6 }
   0x5   :  { %3663 = sst [smem:[#allocation24_spill]] %s3651_s9 }
   0x6   :  { %3664 = sst [smem:[#allocation25_spill]] %s3652_s10 }
   0x7   :  { %15 = vsyncpa [#allocation3], 0 }
   0x8   :  { %17 = vsyncpa [#allocation3 + $0x1], 0 }
   0x9   :  { %18 = vsyncpa [#allocation6], 0 }
   0xa   :  { %20 = vsyncpa [#allocation6 + $0x1], 0 }
   0xb   :  { %21 = vsyncpa [#allocation9], 0 }
   0xc   :  { %22 = vsyncpa [#allocation12], 0 }
   0xd   :  { %23 = vsyncpa [#allocation4], 0 }
   0xe   :  { %25 = vsyncpa [#allocation4 + $0x1], 0  ;;  %s3111_s13 = smov 0   ;;  %s3113_s14 = smov 0  }
   0xf   :  { %s3115_s15 = smov 0   ;;  %s3117_s16 = smov 0  }
  0x10 LB: > { %s3045_s17 = smov [#allocation7]   ;;  %s3132_s19 = sadd.s32 4294967295, %s3043_s16   ;;  %s3043_s16 = sphi %s3117_s16, %s3696_s16   ;;  %s3039_s15 = sphi %s3115_s15, %s3695_s15   ;;  %s3035_s14 = sphi %s3113_s14, %s3694_s14   ;;  %s3031_s13 = sphi %s3111_s13, %s3693_s13  }
  0x11   : > { %s294_s18 = sshll.u32 %s3045_s17, 4  ;;  %p2396_p0 = scmp.ge.s32.totalorder %s3043_s16, 1  ;;  %s3137_s18 = int_to_ptr.vmem [resolvable:$true] %s294_s18 }
  0x12   : > { %p3654_p1 = scmp.eq.s32.totalorder %s3132_s19, 0  ;;  %p282_p2 = scmp.lt.s32.totalorder %s3043_s16, 3 }
  0x13   : > { %s3046_s21 = smov [#allocation8]   ;;  %s3047_s24 = smov [#allocation10]  }
  0x14   : > { %p3139_p3 = pnand %p2396_p0, %p282_p2  ;;  %s310_s22 = sshll.u32 %s3046_s21, 4  ;;  %s3152_s22 = int_to_ptr.vmem [resolvable:$true] %s310_s22 }
  0x15   : > { %s326_s25 = sshll.u32 %s3047_s24, 4  ;;  %s3667_s2 = sld [smem:[#allocation21_spill]]  ;;  %s3154_s25 = int_to_ptr.vmem [resolvable:$true] %s326_s25 }
  0x16   : > { %s3665_s20 = scalar_select %p3139_p3, 1, 0 }
  0x17   : > { %p2699_p5 = pneg %p3139_p3 }
  0x19   : > { %p3148_p6 = pnand %p2699_p5, %p3654_p1 }
  0x1b   : > { %s2789_s28 = scalar_lea.hbm %s3667_s2, 512  ;;  %p3164_p8 = pneg %p3148_p6 }
  0x1c   : > { %p2790_p7 = scmp.ne.s32.totalorder %s3667_s2, %s2789_s28  ;;  %p2796_p11 = scmp.lt.u32.totalorder %s2789_s28, %s3667_s2 }
  0x1e   : > { %p2792_p9 = pnand %p3164_p8, %p2790_p7 }
  0x20   : > { %p2793_p10 = pneg %p2792_p9 }
  0x22   : > { %p2798_p12 = pnand %p2796_p11, %p2793_p10 }
  0x24   : > { %2801 = shalt.err (!%p2798_p12)
}
  0x25   : > { %s2802_s21 = scalar_lea.vmem %s3137_s18, 512  ;;  %p2810_p5 = scmp.lt.s32.totalorder %s3137_s18, %s3137_s18 }
  0x26   : > { %p2803_p13 = scmp.ne.s32.totalorder %s3137_s18, %s2802_s21  ;;  %p2811_p4 = scmp.lt.s32.totalorder %s2802_s21, %s2802_s21 }
  0x28   : > { %p2805_p0 = pnand %p2803_p13, %p3164_p8  ;;  %p2812_p7 = por %p2811_p4, %p2810_p5 }
  0x2a   : > { %p2806_p2 = pneg %p2805_p0 }
  0x2c   : > { %p2813_p9 = pnand %p2812_p7, %p2806_p2 }
  0x2e   : > { %2816 = shalt.err (!%p2813_p9)
}
  0x2f   : > { %s3656_s24 = smov 128   ;;  %s3657_s26 = smov 8  }
  0x30   : > { %2702 = dma.hbm_to_vmem [thread:$0]  (!%p3148_p6), %s3667_s2, 512, %s3137_s18, [#allocation6], %s3656_s24, %s3656_s24, %s3657_s26  }
  0x31   : > { %s3669_s4 = sld [smem:[#allocation22_spill]] }
  0x37   : > { %s2817_s12 = scalar_lea.hbm %s3669_s4, 512 }
  0x38   : > { %p2818_p4 = scmp.ne.s32.totalorder %s3669_s4, %s2817_s12  ;;  %p2824_p12 = scmp.lt.u32.totalorder %s2817_s12, %s3669_s4 }
  0x3a   : > { %p2820_p10 = pnand %p2818_p4, %p3164_p8 }
  0x3c   : > { %p2821_p11 = pneg %p2820_p10 }
  0x3e   : > { %p2826_p13 = pnand %p2824_p12, %p2821_p11 }
  0x40   : > { %2829 = shalt.err (!%p2826_p13)
}
  0x41   : > { %s2830_s18 = scalar_lea.vmem %s3152_s22, 512  ;;  %p2838_p7 = scmp.lt.s32.totalorder %s3152_s22, %s3152_s22 }
  0x42   : > { %p2831_p0 = scmp.ne.s32.totalorder %s3152_s22, %s2830_s18  ;;  %p2839_p9 = scmp.lt.s32.totalorder %s2830_s18, %s2830_s18 }
  0x44   : > { %p2833_p2 = pnand %p2831_p0, %p3164_p8  ;;  %p2840_p4 = por %p2839_p9, %p2838_p7 }
  0x46   : > { %p2834_p5 = pneg %p2833_p2 }
  0x48   : > { %p2841_p10 = pnand %p2840_p4, %p2834_p5 }
  0x4a   : > { %2844 = shalt.err (!%p2841_p10)
}
  0x4b   : > { %2705 = dma.hbm_to_vmem [thread:$0]  (!%p3148_p6), %s3669_s4, 512, %s3152_s22, [#allocation9], %s3656_s24, %s3656_s24, %s3657_s26  }
  0x4c   : > { %s3670_s6 = sld [smem:[#allocation23_spill]] }
  0x52   : > { %s2845_s29 = scalar_lea.hbm %s3670_s6, 512 }
  0x53   : > { %p2846_p11 = scmp.ne.s32.totalorder %s3670_s6, %s2845_s29  ;;  %p2852_p0 = scmp.lt.u32.totalorder %s2845_s29, %s3670_s6 }
  0x55   : > { %p2848_p12 = pnand %p2846_p11, %p3164_p8 }
  0x57   : > { %p2849_p13 = pneg %p2848_p12 }
  0x59   : > { %p2854_p2 = pnand %p2852_p0, %p2849_p13 }
  0x5b   : > { %2857 = shalt.err (!%p2854_p2)
}
  0x5c   : > { %s2858_s22 = scalar_lea.vmem %s3154_s25, 512  ;;  %p2866_p4 = scmp.lt.s32.totalorder %s3154_s25, %s3154_s25 }
  0x5d   : > { %p2859_p5 = scmp.ne.s32.totalorder %s3154_s25, %s2858_s22  ;;  %p2867_p10 = scmp.lt.s32.totalorder %s2858_s22, %s2858_s22 }
  0x5f   : > { %p2861_p7 = pnand %p2859_p5, %p3164_p8  ;;  %p2868_p11 = por %p2867_p10, %p2866_p4 }
  0x61   : > { %p2862_p9 = pneg %p2861_p7 }
  0x63   : > { %p2869_p12 = pnand %p2868_p11, %p2862_p9 }
  0x65   : > { %2872 = shalt.err (!%p2869_p12)
}
  0x66   : > { %2708 = dma.hbm_to_vmem [thread:$0]  (!%p3148_p6), %s3670_s6, 512, %s3154_s25, [#allocation9], %s3656_s24, %s3656_s24, %s3657_s26  }
  0x67   : > { %s3050_s10 = smov [#allocation11]   ;;  %s2873_s30 = scalar_lea.hbm %s3650_s8, 512 }
  0x68   : > { %s342_s27 = sshll.u32 %s3050_s10, 4  ;;  %p2874_p13 = scmp.ne.s32.totalorder %s3650_s8, %s2873_s30  ;;  %s343_s27 = int_to_ptr.vmem [resolvable:$true] %s342_s27 }
  0x69   : > { %p2880_p5 = scmp.lt.u32.totalorder %s2873_s30, %s3650_s8 }
  0x6a   : > { %p2876_p0 = pnand %p2874_p13, %p3164_p8 }
  0x6c   : > { %p2877_p2 = pneg %p2876_p0 }
  0x6e   : > { %p2882_p7 = pnand %p2880_p5, %p2877_p2 }
  0x70   : > { %2885 = shalt.err (!%p2882_p7)
}
  0x71   : > { %s2886_s25 = scalar_lea.vmem %s343_s27, 512  ;;  %p2894_p11 = scmp.lt.s32.totalorder %s343_s27, %s343_s27 }
  0x72   : > { %p2887_p9 = scmp.ne.s32.totalorder %s343_s27, %s2886_s25  ;;  %p2895_p12 = scmp.lt.s32.totalorder %s2886_s25, %s2886_s25 }
  0x74   : > { %p2889_p4 = pnand %p2887_p9, %p3164_p8  ;;  %p2896_p1 = por %p2895_p12, %p2894_p11 }
  0x76   : > { %p2890_p10 = pneg %p2889_p4 }
  0x78   : > { %p2897_p3 = pnand %p2896_p1, %p2890_p10 }
  0x7a   : > { %2900 = shalt.err (!%p2897_p3)
}
  0x7b   : > { %2711 = dma.hbm_to_vmem [thread:$0]  (!%p3148_p6), %s3650_s8, 512, %s343_s27, [#allocation12], %s3656_s24, %s3656_s24, %s3657_s26  }
  0x7c   : > { %s2395_s23 = sadd.s32 4294967294, %s3043_s16   ;;  %s3263_s11 = sadd.s32 1, %s3043_s16  }
  0x7d   : > { %s35_s10 = ssub.s32 %s3043_s16, %s3263_s11  ;;  %s38_s28 = sadd.s32 1, %s3039_s15 }
  0x7e   : > { %p36_p1 = scmp.eq.s32.totalorder %s35_s10, 0  ;;  %p45_p3 = scmp.ne.s32.totalorder %s3039_s15, %s3035_s14 }
  0x7f   : > { %p46_p8 = scmp.eq.s32.totalorder %s3043_s16, 0  ;;  %p51_p13 = scmp.ne.s32.totalorder %s3035_s14, %s3031_s13 }
  0x80   : > { %s3274_s29 = scalar_select %p36_p1, %s3039_s15, %s38_s28  }
  0x81   : > { %p3276_p0 = por %p46_p8, %p45_p3  ;;  %p3672_p2 = scmp.eq.s32.totalorder %s3132_s19, 0 }
  0x82   : > { %p269_p5 = scmp.eq.s32.totalorder %s3132_s19, 1  ;;  %p275_p7 = scmp.eq.s32.totalorder %s2395_s23, 1 }
  0x83   : > { %p3282_p6 = por %p3672_p2, %p51_p13  ;;  %p2727_p9 = scmp.lt.s32.totalorder %s3043_s16, 2 }
  0x84   : > { %s3289_s12 = sand.u32 1, %s3039_s15   ;;  %p3291_p4 = por %p269_p5, %p45_p3 }
  0x85   : > { %p3295_p10 = por %p275_p7, %p51_p13  ;;  %s2402_s22 = sshll.u32 %s3289_s12, 3 }
  0x86   : > { %s3674_s17 = scalar_select %p3291_p4, 1, 0 }
  0x87   : > { %s3675_s21 = scalar_select %p3295_p10, 1, 0 }
  0x88   : > { %s2403_s25 = sshll.u32 %s3043_s16, 7  ;;  %s3676_s0 = sld [smem:[#allocation20_spill]] }
  0x89   : > { %s363_s10 = scalar_lea.vmem [#allocation2], %s2402_s22  ;;  %p3310_p11 = pnand %p2727_p9, %p3276_p0 }
  0x8a   : > { %s370_s28 = sshll.u32 %s363_s10, 4  ;;  %s2404_s26 = sshll.u32 %s3289_s12, 4  ;;  %s3306_s28 = int_to_ptr.vmem [resolvable:$true] %s370_s28 }
  0x8b   : > { %s360_s18 = scalar_lea.sflag [#allocation3], %s3289_s12  ;;  %p2903_p1 = pneg %p3310_p11 }
  0x8e   : > { %s3304_s23 = scalar_lea.hbm %s3676_s0, %s2403_s25  ;;  %s2906_s30 = scalar_lea.hbm %s3676_s0, 256 }
  0x8f   : > { %s2901_s25 = scalar_lea.hbm %s3304_s23, 128  ;;  %p2907_p13 = scmp.lt.u32.totalorder %s3304_s23, %s3676_s0 }
  0x90   : > { %p2902_p12 = scmp.ne.s32.totalorder %s3304_s23, %s2901_s25  ;;  %p2908_p0 = scmp.lt.u32.totalorder %s2906_s30, %s2901_s25 }
  0x91   : > { %p2910_p5 = scmp.lt.u32.totalorder %s2901_s25, %s3304_s23 }
  0x92   : > { %p2904_p3 = pnand %p2903_p1, %p2902_p12  ;;  %p2909_p2 = por %p2908_p0, %p2907_p13 }
  0x94   : > { %p2905_p8 = pneg %p2904_p3  ;;  %p2911_p7 = por %p2910_p5, %p2909_p2 }
  0x96   : > { %p2912_p9 = pnand %p2911_p7, %p2905_p8 }
  0x98   : > { %2915 = shalt.err (!%p2912_p9)
}
  0x99   : > { %s2916_s2 = scalar_lea.vmem %s3306_s28, 128  ;;  %s3051_s22 = smov [#allocation2]  }
  0x9a   : > { %p2917_p12 = scmp.ne.s32.totalorder %s3306_s28, %s2916_s2  ;;  %s2921_s9 = sshll.u32 %s3051_s22, 4  ;;  %s2922_s9 = int_to_ptr.vmem [resolvable:$false] %s2921_s9 }
  0x9b   : > { %s2923_s4 = scalar_lea.vmem %s2922_s9, 256  ;;  %p2924_p4 = scmp.lt.s32.totalorder %s3306_s28, %s2922_s9 }
  0x9c   : > { %p2919_p3 = pnand %p2917_p12, %p2903_p1  ;;  %p2925_p13 = scmp.lt.s32.totalorder %s2923_s4, %s2916_s2 }
  0x9e   : > { %p2920_p10 = pneg %p2919_p3  ;;  %p2926_p0 = por %p2925_p13, %p2924_p4 }
  0xa0   : > { %p2927_p2 = pnand %p2926_p0, %p2920_p10 }
  0xa2   : > { %2930 = shalt.err (!%p2927_p2)
}
  0xa3   : > { %2715 = dma.hbm_to_vmem [thread:$0]  (!%p3310_p11), %s3304_s23, 128, %s3306_s28, %s360_s18  }
  0xa4   : > { %s381_s25 = scalar_lea.vmem [#allocation5], %s2404_s26  ;;  %s2485_s10 = sshll.u32 %s3043_s16, 8 }
  0xa5   : > { %s388_s30 = sshll.u32 %s381_s25, 4  ;;  %s3350_s9 = scalar_lea.hbm %s3643_s1, %s2485_s10  ;;  %s3344_s30 = int_to_ptr.vmem [resolvable:$true] %s388_s30 }
  0xa6   : > { %s3678_s4 = sand.u32 1, %s3043_s16   ;;  %s2931_s6 = scalar_lea.hbm %s3350_s9, 256 }
  0xa7   : > { %s3354_s0 = scalar_lea.sflag [#allocation6], %s3678_s4  ;;  %p2932_p4 = scmp.ne.s32.totalorder %s3350_s9, %s2931_s6 }
  0xa8   : > { %s2936_s23 = scalar_lea.hbm %s3643_s1, 512  ;;  %p2937_p5 = scmp.lt.u32.totalorder %s3350_s9, %s3643_s1 }
  0xa9   : > { %p2934_p10 = pnand %p2932_p4, %p2903_p1  ;;  %p2938_p7 = scmp.lt.u32.totalorder %s2936_s23, %s2931_s6 }
  0xaa   : > { %p2940_p12 = scmp.lt.u32.totalorder %s2931_s6, %s3350_s9 }
  0xab   : > { %p2935_p8 = pneg %p2934_p10  ;;  %p2939_p9 = por %p2938_p7, %p2937_p5 }
  0xad   : > { %p2941_p3 = por %p2940_p12, %p2939_p9 }
  0xaf   : > { %p2942_p13 = pnand %p2941_p3, %p2935_p8 }
  0xb1   : > { %2945 = shalt.err (!%p2942_p13)
}
  0xb2   : > { %s2946_s25 = scalar_lea.vmem %s3344_s30, 256  ;;  %s3052_s10 = smov [#allocation5]  }
  0xb3   : > { %p2947_p0 = scmp.ne.s32.totalorder %s3344_s30, %s2946_s25  ;;  %s2951_s22 = sshll.u32 %s3052_s10, 4  ;;  %s2952_s22 = int_to_ptr.vmem [resolvable:$false] %s2951_s22 }
  0xb4   : > { %s2953_s2 = scalar_lea.vmem %s2952_s22, 512  ;;  %p2954_p10 = scmp.lt.s32.totalorder %s3344_s30, %s2952_s22 }
  0xb5   : > { %p2949_p2 = pnand %p2947_p0, %p2903_p1  ;;  %p2955_p5 = scmp.lt.s32.totalorder %s2953_s2, %s2946_s25 }
  0xb7   : > { %p2950_p4 = pneg %p2949_p2  ;;  %p2956_p7 = por %p2955_p5, %p2954_p10 }
  0xb9   : > { %p2957_p9 = pnand %p2956_p7, %p2950_p4 }
  0xbb   : > { %2960 = shalt.err (!%p2957_p9)
}
  0xbc   : > { %s3679_s6 = smov 8   ;;  %s3680_s4 = smov 128  }
  0xbd   : > { %2718 = dma.hbm_to_vmem [thread:$0]  (!%p3310_p11), %s3350_s9, 256, %s3344_s30, %s3354_s0, %s3680_s4, %s3680_s4, %s3679_s6  }
  0xbe   : > { %p3681_p1 = scmp.ne.s32.totalorder %s3665_s20, 0 }
  0xbf   : > { %s3386_s26 = sand.u32 (!%p3681_p1), 1, %s3035_s14  }
  0xc0   : > { %400 = sbr.rel (%p3681_p1) target bundleno = 4126 (0x101e), region = 60  ;;  %s2408_s12 = sshll.u32 (!%p3681_p1), %s3386_s26, 3 }
  0xc1   : > { %s403_s23 = scalar_lea.sflag (!%p3681_p1), [#allocation3], %s3386_s26  ;;  %s406_s24 = scalar_lea.vmem (!%p3681_p1), [#allocation2], %s2408_s12 }
  0xc7   : > { %3006 = dma.done.wait (%p3282_p6), %s403_s23, 128  }
  0xc8   : > { %3008 = vsyncadd (%p3282_p6), %s403_s23, 4294967168  ;;  %s411_s0 = sand.u32 1, %s3132_s19   ;;  %s2409_s20 = sshll.u32 %s3386_s26, 4 }
  0xc9   : > { %s412_s30 = scalar_lea.sflag [#allocation6], %s411_s0  ;;  %s415_s9 = scalar_lea.vmem [#allocation5], %s2409_s20 }
  0xca   : > { %3010 = dma.done.wait (%p3282_p6), %s412_s30, 256  }
  0xcb   : > { %3012 = vsyncadd (%p3282_p6), %s412_s30, 4294967040  ;;  %p3682_p11 = scmp.eq.s32.totalorder %s3132_s19, 0 }
  0xcd   : > { %3014 = dma.done.wait (%p3682_p11), [#allocation6], 512   ;;  %p3683_p8 = pmov %p3682_p11 }
  0xcf   : > { %3016 = vsyncadd (%p3683_p8), [#allocation6], 4294966784  ;;  %p3684_p12 = pmov %p3683_p8 }
  0xd0   : > { %p3685_p3 = pmov %p3683_p8 }
  0xd1   : > { %3018 = dma.done.wait (%p3684_p12), [#allocation9], 1024  }
  0xd2   : > { %3020 = vsyncadd (%p3685_p3), [#allocation9], 4294966272  ;;  %p3686_p13 = pmov %p3685_p3 }
  0xd3   : > { %p3687_p0 = pmov %p3685_p3 }
  0xd4   : > { %3022 = dma.done.wait (%p3686_p13), [#allocation12], 512  }
  0xd5   : > { %3024 = vsyncadd (%p3687_p0), [#allocation12], 4294966784  ;;  %v3053_v0 = vmov 0.0   ;;  %vm3054_vm0 = vmmov 0   ;;  %vm492_vm1 = vcmask 261120   ;;  %v484_v1 = vld [vmem:[#allocation7] sm:$0xff] }
  0xd6   : > { %2542 = vmatprep.subr.mxu1 %v3053_v0  ;;  %2544 = vmatprep.mubr.msk.f32.mxu1 %vm3054_vm0, %v3053_v0  ;;  %v569_v2 = vld [vmem:[#allocation8] sm:$0xff]  ;;  %v3418_v3 = vld [vmem:[%s406_s24] sm:$0xff]  ;;  %vm749_vm2 = vcmask 64512   ;;  %vm797_vm3 = vcmask 130048   ;;  %v1013_v41 = vld [vmem:[#allocation8 + $0x8] sm:$0xff]  ;;  %s3688_s0 = sld [smem:[#allocation24_spill]] }
  0xd7   : > { %2543 = vmatpush3.xpose.msk.msra.mxu1 %vm492_vm1, %v484_v1  ;;  %v3420_v4 = vld [vmem:[%s415_s9] sm:$0xff]  ;;  %v3430_v5 = vld [vmem:[%s415_s9 + $0x8] sm:$0xff]  ;;  %s2482_s20 = sshll.u32 %s3132_s19, 7  ;;  %s472_s30 = scalar_lea.vmem [#allocation13], %s2408_s12 }
  0xd8   : > { %2547 = vmatprep.subr.msk.mxu1 %vm492_vm1, %v569_v2  ;;  %2554 = vmatprep.mubr.msk.f32.mxu0 %vm492_vm1, %v3420_v4  ;;  %v2419_v8 = vld [vmem:[%s3647_s5] ss:$0 sm:$0xff]  ;;  %v661_v18 = vld [vmem:[#allocation10] sm:$0xff]  ;;  %v930_v42 = vld [vmem:[#allocation7 + $0x8] sm:$0xff]  ;;  %s2264_s9 = sshll.u32 %s472_s30, 4  ;;  %s3689_s18 = sld [smem:[#allocation25_spill]]  ;;  %s3599_s9 = int_to_ptr.vmem [resolvable:$true] %s2264_s9 }
  0xd9   : > { %v2416_v14 = vld [vmem:[%s3645_s3] ss:$0 sm:$0xff]  ;;  %2552 = vmatprep.subr.msk.mxu0 %vm492_vm1, %v661_v18  ;;  %v854_v40 = vld [vmem:[#allocation11] sm:$0xff]  ;;  %v2435_v49 = vld [vmem:[%s3647_s5 + $0x1] ss:$0 sm:$0xff]  ;;  %s2251_s10 = scalar_lea.sflag [#allocation4], %s3386_s26 }
  0xda   : > { %2545 = vmatmul.mubr.msk.f32.vlgmr.msra.gmra.mrb[0].mxu1 %vm492_vm1, %v3418_v3  ;;  %2553 = vmatpush3.xpose.msk.msra.mxu0 %vm492_vm1, %v661_v18  ;;  %v2423_v31 = vld [vmem:[%s3649_s7] ss:$0 sm:$0xff]  ;;  %v2431_v54 = vld [vmem:[%s3645_s3 + $0x1] ss:$0 sm:$0xff]  ;;  %v1101_v59 = vld [vmem:[#allocation10 + $0x8] sm:$0xff]  ;;  %s2961_s19 = scalar_lea.vmem %s3599_s9, 128 }
  0xdb   : > { %2548 = vmatpush3.xpose.msk.msra.mxu1 %vm492_vm1, %v569_v2  ;;  %2549 = vmatprep.mubr.msk.f32.mxu1 %vm492_vm1, %v3420_v4  ;;  %p2962_p6 = scmp.ne.s32.totalorder %s3599_s9, %s2961_s19  ;;  %p3690_p2 = scmp.ne.s32.totalorder %s3674_s17, 0 }
  0xdc   : > { %2557 = vmatprep.subr.bf16.mxu1 %v3053_v0  ;;  %2563 = vmatprep.subr.bf16.mxu0 %v3053_v0  ;;  %s3055_s12 = smov [#allocation13]  }
  0xdd   : > { %2555 = vmatmul.mubr.msk.f32.vlgmr.msra.gmra.mrb[0].mxu0 %vm492_vm1, %v3430_v5  ;;  %p2963_p4 = pnand %p2962_p6, %p3690_p2  ;;  %s2965_s22 = sshll.u32 %s3055_s12, 4  ;;  %s2966_s22 = int_to_ptr.vmem [resolvable:$false] %s2965_s22 }
  0xde   : > { %2550 = vmatmul.mubr.msk.f32.vlgmr.msra.gmra.mrb[2].mxu1 %vm492_vm1, %v3430_v5  ;;  %2565 = vmatprep.mubr.msk.bf16.mxu0 %vm3054_vm0, %v3053_v0  ;;  %s3597_s25 = scalar_lea.hbm %s3689_s18, %s2482_s20  ;;  %s2967_s2 = scalar_lea.vmem %s2966_s22, 256 }
  0xdf   : > { %2559 = vmatprep.mubr.msk.bf16.mxu1 %vm3054_vm0, %v3053_v0  ;;  %p2964_p10 = pneg %p2963_p4  ;;  %p2968_p5 = scmp.lt.s32.totalorder %s3599_s9, %s2966_s22 }
  0xe0   : > { %p2969_p7 = scmp.lt.s32.totalorder %s2967_s2, %s2961_s19 }
  0xe2   : > { %p2970_p9 = por %p2969_p7, %p2968_p5 }
  0xe4   : > { %p2971_p1 = pnand %p2970_p9, %p2964_p10 }
 0x1ad   : > { %v565_v6 = vpop.f32.mrb[0].mxu1 }
 0x1ae   : > { %v2546_v7 = vpop.f32.mrb[1].mxu1  ;;  %v566_v16 = vadd.f32 %v2416_v14, %v565_v6 }
 0x1b0   : > { %v747_v17 = vpack.c.bf16 %v566_v16, %v566_v16  ;;  %v2556_v30 = vpop.f32.mrb[0].mxu0 }
 0x1b1   : > { %v2551_v9 = vpop.f32.mrb[2].mxu1  ;;  %v738_v32 = vpop.f32.mrb[1].mxu0  ;;  %v744_v33 = vadd.f32 %v2556_v30, %v2423_v31  ;;  %v2452_v30 = vld [vmem:[%s3647_s5 + $0x2] ss:$0 sm:$0xff] }
 0x1b2   : > { %v658_v10 = vadd.f32 %v2551_v9, %v2419_v8  ;;  %v652_v11 = vpop.f32.mrb[3].mxu1  ;;  %v739_v34 = vadd.f32 %v2423_v31, %v738_v32 }
 0x1b3   : > { %v653_v12 = vadd.f32 %v2419_v8, %v652_v11 }
 0x1b4   : > { %v810_v35 = vpack.c.bf16 %v744_v33, %v739_v34 }
 0x1b5   : > { %v748_v13 = vpack.c.bf16 %v658_v10, %v653_v12  ;;  %v2440_v12 = vld [vmem:[%s3649_s7 + $0x1] ss:$0 sm:$0xff] }
 0x1b6   : > { %2564 = vmatpush3.bf16.msra.mxu0 %v810_v35 }
 0x1b7   : > { %v754_v15 = vsel %vm749_vm2, %v748_v13, 0  ;;  %2569 = vmatprep.subr.mxu0 %v3053_v0 }
 0x1b8   : > { %2558 = vmatpush3.bf16.xpose.msra.mxu1 %v754_v15 }
 0x1b9   : > { %2574 = vmatprep.subr.mxu1 %v3053_v0 }
 0x1bf   : > { %2560 = vmatmul.mubr.msk.bf16.vlgmr.msra.gmra.mrb[4].mxu1 %vm749_vm2, %v747_v17 }
 0x1c0   : > { %2576 = vmatprep.mubr.msk.f32.mxu1 %vm3054_vm0, %v3053_v0  ;;  %2575 = vmatpush3.xpose.msk.msra.mxu1 %vm492_vm1, %v930_v42 }
 0x1c1   : > { %2584 = vmatprep.subr.msk.mxu1 %vm492_vm1, %v1101_v59 }
 0x1c7   : > { %2577 = vmatmul.mubr.msk.f32.vlgmr.msra.gmra.mrb[8].mxu1 %vm492_vm1, %v3418_v3 }
 0x1c8   : > { %2586 = vmatprep.mubr.msk.f32.mxu1 %vm492_vm1, %v3420_v4  ;;  %2585 = vmatpush3.xpose.msk.msra.mxu1 %vm492_vm1, %v1101_v59 }
 0x1c9   : > { %2595 = vmatprep.subr.bf16.mxu1 %v3053_v0 }
 0x1cb   : > { %2587 = vmatmul.mubr.msk.f32.vlgmr.msra.gmra.mrb[10].mxu1 %vm492_vm1, %v3430_v5 }
 0x1cc   : > { %2597 = vmatprep.mubr.msk.bf16.mxu1 %vm3054_vm0, %v3053_v0 }
 0x292   : > { %v790_v19 = vpop.f32.mrb[4].mxu1 }
 0x293   : > { %v796_v20 = vmul.f32 0.35355338, %v790_v19  ;;  %v2561_v21 = vpop.f32.mrb[5].mxu1 }
 0x294   : > { %v793_v22 = vpop.f32.mrb[6].mxu1  ;;  %v1370_v21 = vld [vmem:[#allocation7 + $0x10] sm:$0xff] }
 0x295   : > { %v2562_v23 = vpop.f32.mrb[7].mxu1  ;;  %v798_v24 = vsel %vm797_vm3, %v796_v20, -inf  ;;  %v1453_v22 = vld [vmem:[#allocation8 + $0x10] sm:$0xff] }
 0x296   : > { %799 = vmax.xlane.f32.xlu0 %v798_v24  ;;  %v1294_v23 = vld [vmem:[#allocation11 + $0x8] sm:$0xff] }
 0x29a   : > { %v1008_v47 = vpop.f32.mrb[8].mxu1 }
 0x29b   : > { %v2578_v48 = vpop.f32.mrb[9].mxu1  ;;  %v1009_v57 = vadd.f32 %v2431_v54, %v1008_v47 }
 0x29d   : > { %v1188_v58 = vpack.c.bf16 %v1009_v57, %v1009_v57 }
 0x29e   : > { %v2588_v11 = vpop.f32.mrb[10].mxu1 }
 0x29f   : > { %v1179_v13 = vpop.f32.mrb[11].mxu1  ;;  %v1185_v14 = vadd.f32 %v2588_v11, %v2440_v12 }
 0x2a0   : > { %v1180_v15 = vadd.f32 %v2440_v12, %v1179_v13 }
 0x2a2   : > { %v1249_v16 = vpack.c.bf16 %v1185_v14, %v1180_v15 }
 0x2a4   : > { %2596 = vmatpush3.bf16.msra.mxu1 %v1249_v16 }
 0x2a5   : > { %2606 = vmatprep.subr.mxu1 %v3053_v0 }
 0x323   : > { %v800_v25 = vpop.xlane.xlu0 %799 }
 0x324   : > { %v801_v26 = vsub.f32 %v796_v20, %v800_v25 }
 0x326   : > { %v802_v27 = vmul.f32 1.442695, %v801_v26 }
 0x328   : > { %2773 = vpow2.f32 %v802_v27 }
 0x332   : > { %v2774_v28 = vpop.eup %2773 }
 0x333   : > { %v804_v29 = vsel %vm797_vm3, %v2774_v28, 0.0 }
 0x334   : > { %805 = vadd.xlane.f32.xlu0 %v804_v29 }
 0x3c1   : > { %v806_v36 = vpop.xlane.xlu0 %805 }
 0x3c2   : > { %2775 = vrcp.f32 %v806_v36  ;;  %v2448_v36 = vld [vmem:[%s3645_s3 + $0x2] ss:$0 sm:$0xff] }
 0x3cc   : > { %v2776_v37 = vpop.eup %2775 }
 0x3cd   : > { %v808_v38 = vmul.f32 %v2776_v37, %v2774_v28 }
 0x3cf   : > { %v809_v39 = vpack.c.bf16 %v808_v38, %v808_v38 }
 0x3d1   : > { %2566 = vmatmul.mubr.msk.bf16.vlgmr.msra.gmra.mrb[4].mxu0 %vm797_vm3, %v809_v39 }
 0x3d2   : > { %2570 = vmatpush3.msra.mxu0 %v854_v40  ;;  %2571 = vmatprep.mubr.msk.f32.mxu0 %vm3054_vm0, %v3053_v0  ;;  %v1541_v40 = vld [vmem:[#allocation10 + $0x10] sm:$0xff] }
 0x3d3   : > { %2579 = vmatprep.subr.msk.mxu0 %vm492_vm1, %v1013_v41 }
 0x4a4   : > { %v848_v43 = vpop.f32.mrb[4].mxu0 }
 0x4a5   : > { %v2567_v44 = vpop.f32.mrb[5].mxu0  ;;  %2572 = vmatmul.mubr.msk.f32.vlgmr.msra.gmra.mrb[2].mxu0 %vm749_vm2, %v848_v43 }
 0x4a6   : > { %v851_v45 = vpop.f32.mrb[6].mxu0  ;;  %2580 = vmatpush3.xpose.msk.msra.mxu0 %vm492_vm1, %v1013_v41  ;;  %2581 = vmatprep.mubr.msk.f32.mxu0 %vm492_vm1, %v3420_v4 }
 0x4a7   : > { %v2568_v46 = vpop.f32.mrb[7].mxu0  ;;  %2589 = vmatprep.subr.bf16.mxu0 %v3053_v0 }
 0x4a9   : > { %2582 = vmatmul.mubr.msk.f32.vlgmr.msra.gmra.mrb[8].mxu0 %vm492_vm1, %v3430_v5 }
 0x4aa   : > { %2591 = vmatprep.mubr.msk.bf16.mxu0 %vm3054_vm0, %v3053_v0 }
 0x57c   : > { %v2583_v50 = vpop.f32.mrb[8].mxu0 }
 0x57d   : > { %v1097_v51 = vadd.f32 %v2583_v50, %v2435_v49  ;;  %v1091_v52 = vpop.f32.mrb[9].mxu0 }
 0x57e   : > { %v1092_v53 = vadd.f32 %v2435_v49, %v1091_v52 }
 0x580   : > { %v1189_v55 = vpack.c.bf16 %v1097_v51, %v1092_v53  ;;  %v2457_v53 = vld [vmem:[%s3649_s7 + $0x2] ss:$0 sm:$0xff] }
 0x582   : > { %v1194_v56 = vsel %vm749_vm2, %v1189_v55, 0 }
 0x583   : > { %2590 = vmatpush3.bf16.xpose.msra.mxu0 %v1194_v56 }
 0x584   : > { %2601 = vmatprep.subr.mxu0 %v3053_v0 }
 0x58a   : > { %2592 = vmatmul.mubr.msk.bf16.vlgmr.msra.gmra.mrb[12].mxu0 %vm749_vm2, %v1188_v58 }
 0x58b   : > { %2603 = vmatprep.mubr.msk.f32.mxu0 %vm3054_vm0, %v3053_v0  ;;  %2602 = vmatpush3.msra.mxu0 %v1294_v23 }
 0x58c   : > { %2616 = vmatprep.subr.msk.mxu0 %vm492_vm1, %v1541_v40 }
 0x65d   : > { %v1230_v60 = vpop.f32.mrb[12].mxu0 }
 0x65e   : > { %v1236_v61 = vmul.f32 0.35355338, %v1230_v60  ;;  %v2593_v62 = vpop.f32.mrb[13].mxu0 }
 0x65f   : > { %v1233_v63 = vpop.f32.mrb[14].mxu0  ;;  %v1734_v62 = vld [vmem:[#allocation11 + $0x10] sm:$0xff] }
 0x660   : > { %v2594_v1 = vpop.f32.mrb[15].mxu0  ;;  %v1237_v2 = vsel %vm797_vm3, %v1236_v61, -inf  ;;  %v1893_v63 = vld [vmem:[#allocation8 + $0x18] sm:$0xff] }
 0x661   : > { %1238 = vmax.xlane.f32.xlu1 %v1237_v2  ;;  %v1810_v1 = vld [vmem:[#allocation7 + $0x18] sm:$0xff] }
 0x6ee   : > { %v1239_v6 = vpop.xlane.xlu1 %1238 }
 0x6ef   : > { %v1240_v7 = vsub.f32 %v1236_v61, %v1239_v6 }
 0x6f1   : > { %v1241_v8 = vmul.f32 1.442695, %v1240_v7 }
 0x6f3   : > { %2777 = vpow2.f32 %v1241_v8 }
 0x6fd   : > { %v2778_v9 = vpop.eup %2777 }
 0x6fe   : > { %v1243_v10 = vsel %vm797_vm3, %v2778_v9, 0.0 }
 0x6ff   : > { %1244 = vadd.xlane.f32.xlu1 %v1243_v10  ;;  %v2469_v10 = vld [vmem:[%s3647_s5 + $0x3] ss:$0 sm:$0xff] }
 0x78c   : > { %v1245_v17 = vpop.xlane.xlu1 %1244 }
 0x78d   : > { %2779 = vrcp.f32 %v1245_v17 }
 0x797   : > { %v2780_v18 = vpop.eup %2779 }
 0x798   : > { %v1247_v19 = vmul.f32 %v2780_v18, %v2778_v9 }
 0x79a   : > { %v1248_v20 = vpack.c.bf16 %v1247_v19, %v1247_v19  ;;  %v1981_v19 = vld [vmem:[#allocation10 + $0x18] sm:$0xff] }
 0x79c   : > { %2598 = vmatmul.mubr.msk.bf16.vlgmr.msra.gmra.mrb[12].mxu1 %vm797_vm3, %v1248_v20 }
 0x79d   : > { %2607 = vmatpush3.xpose.msk.msra.mxu1 %vm492_vm1, %v1370_v21  ;;  %2608 = vmatprep.mubr.msk.f32.mxu1 %vm3054_vm0, %v3053_v0 }
 0x79e   : > { %2611 = vmatprep.subr.msk.mxu1 %vm492_vm1, %v1453_v22 }
 0x7a4   : > { %2609 = vmatmul.mubr.msk.f32.vlgmr.msra.gmra.mrb[16].mxu1 %vm492_vm1, %v3418_v3 }
 0x7a5   : > { %2612 = vmatpush3.xpose.msk.msra.mxu1 %vm492_vm1, %v1453_v22  ;;  %2613 = vmatprep.mubr.msk.f32.mxu1 %vm492_vm1, %v3420_v4 }
 0x7a6   : > { %2621 = vmatprep.subr.bf16.mxu1 %v3053_v0 }
 0x7a8   : > { %2614 = vmatmul.mubr.msk.f32.vlgmr.msra.gmra.mrb[18].mxu1 %vm492_vm1, %v3430_v5 }
 0x7a9   : > { %2623 = vmatprep.mubr.msk.bf16.mxu1 %vm3054_vm0, %v3053_v0 }
 0x86f   : > { %v1287_v24 = vpop.f32.mrb[12].mxu1 }
 0x870   : > { %v2599_v25 = vpop.f32.mrb[13].mxu1  ;;  %2604 = vmatmul.mubr.msk.f32.vlgmr.msra.gmra.mrb[2].mxu0 %vm749_vm2, %v1287_v24 }
 0x871   : > { %v1290_v26 = vpop.f32.mrb[14].mxu1  ;;  %2618 = vmatprep.mubr.msk.f32.mxu0 %vm492_vm1, %v3420_v4  ;;  %2617 = vmatpush3.xpose.msk.msra.mxu0 %vm492_vm1, %v1541_v40 }
 0x872   : > { %v2600_v27 = vpop.f32.mrb[15].mxu1  ;;  %2627 = vmatprep.subr.bf16.mxu0 %v3053_v0 }
 0x874   : > { %2619 = vmatmul.mubr.msk.f32.vlgmr.msra.gmra.mrb[10].mxu0 %vm492_vm1, %v3430_v5 }
 0x875   : > { %2629 = vmatprep.mubr.msk.bf16.mxu0 %vm3054_vm0, %v3053_v0 }
 0x877   : > { %v1448_v28 = vpop.f32.mrb[16].mxu1 }
 0x878   : > { %v2610_v29 = vpop.f32.mrb[17].mxu1  ;;  %v1449_v38 = vadd.f32 %v2448_v36, %v1448_v28 }
 0x87a   : > { %v1628_v39 = vpack.c.bf16 %v1449_v38, %v1449_v38 }
 0x87b   : > { %v2615_v31 = vpop.f32.mrb[18].mxu1 }
 0x87c   : > { %v1537_v32 = vadd.f32 %v2615_v31, %v2452_v30  ;;  %v1531_v33 = vpop.f32.mrb[19].mxu1 }
 0x87d   : > { %v1532_v34 = vadd.f32 %v2452_v30, %v1531_v33 }
 0x87f   : > { %v1629_v35 = vpack.c.bf16 %v1537_v32, %v1532_v34 }
 0x881   : > { %v1634_v37 = vsel %vm749_vm2, %v1629_v35, 0  ;;  %v2174_v35 = vld [vmem:[#allocation11 + $0x18] sm:$0xff] }
 0x882   : > { %2622 = vmatpush3.bf16.xpose.msra.mxu1 %v1634_v37 }
 0x883   : > { %2638 = vmatprep.subr.mxu1 %v3053_v0 }
 0x889   : > { %2624 = vmatmul.mubr.msk.bf16.vlgmr.msra.gmra.mrb[20].mxu1 %vm749_vm2, %v1628_v39 }
 0x88a   : > { %2640 = vmatprep.mubr.msk.f32.mxu1 %vm3054_vm0, %v3053_v0  ;;  %2639 = vmatpush3.xpose.msk.msra.mxu1 %vm492_vm1, %v1810_v1 }
 0x88b   : > { %2648 = vmatprep.subr.msk.mxu1 %vm492_vm1, %v1981_v19 }
 0x891   : > { %2641 = vmatmul.mubr.msk.f32.vlgmr.msra.gmra.mrb[24].mxu1 %vm492_vm1, %v3418_v3 }
 0x892   : > { %2650 = vmatprep.mubr.msk.f32.mxu1 %vm492_vm1, %v3420_v4  ;;  %2649 = vmatpush3.xpose.msk.msra.mxu1 %vm492_vm1, %v1981_v19 }
 0x893   : > { %2659 = vmatprep.subr.bf16.mxu1 %v3053_v0 }
 0x895   : > { %2651 = vmatmul.mubr.msk.f32.vlgmr.msra.gmra.mrb[26].mxu1 %vm492_vm1, %v3430_v5 }
 0x896   : > { %2661 = vmatprep.mubr.msk.bf16.mxu1 %vm3054_vm0, %v3053_v0 }
 0x947   : > { %v2620_v52 = vpop.f32.mrb[10].mxu0 }
 0x948   : > { %v1619_v54 = vpop.f32.mrb[11].mxu0  ;;  %v1625_v55 = vadd.f32 %v2620_v52, %v2457_v53 }
 0x949   : > { %v1620_v56 = vadd.f32 %v2457_v53, %v1619_v54 }
 0x94b   : > { %v1689_v57 = vpack.c.bf16 %v1625_v55, %v1620_v56 }
 0x94d   : > { %2628 = vmatpush3.bf16.msra.mxu0 %v1689_v57 }
 0x94e   : > { %2633 = vmatprep.subr.mxu0 %v3053_v0 }
 0x95c   : > { %v1670_v41 = vpop.f32.mrb[20].mxu1 }
 0x95d   : > { %v1676_v42 = vmul.f32 0.35355338, %v1670_v41  ;;  %v2625_v43 = vpop.f32.mrb[21].mxu1 }
 0x95e   : > { %v1673_v44 = vpop.f32.mrb[22].mxu1 }
 0x95f   : > { %v2626_v45 = vpop.f32.mrb[23].mxu1  ;;  %v1677_v46 = vsel %vm797_vm3, %v1676_v42, -inf  ;;  %v2415_v44 = vld [vmem:[%s3688_s0] ss:$0 sm:$0xff] }
 0x960   : > { %1678 = vmax.xlane.f32.xlu0 %v1677_v46 }
 0x964   : > { %v1888_v3 = vpop.f32.mrb[24].mxu1 }
 0x965   : > { %v2642_v9 = vpop.f32.mrb[25].mxu1 }
 0x9ed   : > { %v1679_v47 = vpop.xlane.xlu0 %1678 }
 0x9ee   : > { %v1680_v48 = vsub.f32 %v1676_v42, %v1679_v47 }
 0x9f0   : > { %v1681_v49 = vmul.f32 1.442695, %v1680_v48 }
 0x9f2   : > { %2781 = vpow2.f32 %v1681_v49 }
 0x9fc   : > { %v2782_v50 = vpop.eup %2781 }
 0x9fd   : > { %v1683_v51 = vsel %vm797_vm3, %v2782_v50, 0.0 }
 0x9fe   : > { %1684 = vadd.xlane.f32.xlu1 %v1683_v51 }
 0xa8b   : > { %v1685_v58 = vpop.xlane.xlu1 %1684 }
 0xa8c   : > { %2783 = vrcp.f32 %v1685_v58 }
 0xa96   : > { %v2784_v59 = vpop.eup %2783 }
 0xa97   : > { %v1687_v60 = vmul.f32 %v2784_v59, %v2782_v50 }
 0xa99   : > { %v1688_v61 = vpack.c.bf16 %v1687_v60, %v1687_v60 }
 0xa9b   : > { %2630 = vmatmul.mubr.msk.bf16.vlgmr.msra.gmra.mrb[16].mxu0 %vm797_vm3, %v1688_v61 }
 0xa9c   : > { %2634 = vmatpush3.msra.mxu0 %v1734_v62  ;;  %2635 = vmatprep.mubr.msk.f32.mxu0 %vm3054_vm0, %v3053_v0 }
 0xa9d   : > { %2643 = vmatprep.subr.msk.mxu0 %vm492_vm1, %v1893_v63 }
 0xb6e   : > { %v1727_v2 = vpop.f32.mrb[16].mxu0 }
 0xb6f   : > { %v2631_v6 = vpop.f32.mrb[17].mxu0  ;;  %2636 = vmatmul.mubr.msk.f32.vlgmr.msra.gmra.mrb[2].mxu0 %vm749_vm2, %v1727_v2 }
 0xb70   : > { %v1730_v7 = vpop.f32.mrb[18].mxu0  ;;  %2644 = vmatpush3.xpose.msk.msra.mxu0 %vm492_vm1, %v1893_v63  ;;  %2645 = vmatprep.mubr.msk.f32.mxu0 %vm492_vm1, %v3420_v4  ;;  %v2465_v4 = vld [vmem:[%s3645_s3 + $0x3] ss:$0 sm:$0xff] }
 0xb71   : > { %v2632_v8 = vpop.f32.mrb[19].mxu0  ;;  %2653 = vmatprep.subr.bf16.mxu0 %v3053_v0  ;;  %v1889_v17 = vadd.f32 %v2465_v4, %v1888_v3 }
 0xb73   : > { %2646 = vmatmul.mubr.msk.f32.vlgmr.msra.gmra.mrb[20].mxu0 %vm492_vm1, %v3430_v5  ;;  %v2068_v18 = vpack.c.bf16 %v1889_v17, %v1889_v17  ;;  %v2652_v5 = vpop.f32.mrb[26].mxu1 }
 0xb74   : > { %2655 = vmatprep.mubr.msk.bf16.mxu0 %vm3054_vm0, %v3053_v0  ;;  %v2059_v31 = vpop.f32.mrb[27].mxu1 }
 0xc46   : > { %v2647_v11 = vpop.f32.mrb[20].mxu0 }
 0xc47   : > { %v1977_v12 = vadd.f32 %v2647_v11, %v2469_v10  ;;  %v1971_v13 = vpop.f32.mrb[21].mxu0 }
 0xc48   : > { %v1972_v14 = vadd.f32 %v2469_v10, %v1971_v13 }
 0xc4a   : > { %v2069_v15 = vpack.c.bf16 %v1977_v12, %v1972_v14 }
 0xc4c   : > { %v2074_v16 = vsel %vm749_vm2, %v2069_v15, 0 }
 0xc4d   : > { %2654 = vmatpush3.bf16.xpose.msra.mxu0 %v2074_v16 }
 0xc4e   : > { %2665 = vmatprep.subr.mxu0 %v3053_v0 }
 0xc54   : > { %2656 = vmatmul.mubr.msk.bf16.vlgmr.msra.gmra.mrb[24].mxu0 %vm749_vm2, %v2068_v18 }
 0xc55   : > { %2667 = vmatprep.mubr.msk.f32.mxu0 %vm3054_vm0, %v3053_v0  ;;  %v2474_v0 = vld [vmem:[%s3649_s7 + $0x3] ss:$0 sm:$0xff]  ;;  %2666 = vmatpush3.msra.mxu0 %v2174_v35 }
 0xc56   : > { %v2065_v32 = vadd.f32 %v2652_v5, %v2474_v0  ;;  %v2060_v33 = vadd.f32 %v2474_v0, %v2059_v31 }
 0xc58   : > { %v2129_v34 = vpack.c.bf16 %v2065_v32, %v2060_v33 }
 0xc5a   : > { %2660 = vmatpush3.bf16.msra.mxu1 %v2129_v34 }
 0xd27   : > { %v2110_v20 = vpop.f32.mrb[24].mxu0 }
 0xd28   : > { %v2116_v21 = vmul.f32 0.35355338, %v2110_v20  ;;  %v2657_v22 = vpop.f32.mrb[25].mxu0 }
 0xd29   : > { %v2113_v23 = vpop.f32.mrb[26].mxu0 }
 0xd2a   : > { %v2658_v24 = vpop.f32.mrb[27].mxu0  ;;  %v2117_v25 = vsel %vm797_vm3, %v2116_v21, -inf }
 0xd2b   : > { %2118 = vmax.xlane.f32.xlu0 %v2117_v25 }
 0xdb8   : > { %v2119_v26 = vpop.xlane.xlu0 %2118 }
 0xdb9   : > { %v2120_v27 = vsub.f32 %v2116_v21, %v2119_v26 }
 0xdbb   : > { %v2121_v28 = vmul.f32 1.442695, %v2120_v27 }
 0xdbd   : > { %2785 = vpow2.f32 %v2121_v28 }
 0xdc7   : > { %v2786_v29 = vpop.eup %2785 }
 0xdc8   : > { %v2123_v30 = vsel %vm797_vm3, %v2786_v29, 0.0 }
 0xdc9   : > { %2124 = vadd.xlane.f32.xlu1 %v2123_v30 }
 0xe56   : > { %v2125_v36 = vpop.xlane.xlu1 %2124 }
 0xe57   : > { %2787 = vrcp.f32 %v2125_v36 }
 0xe61   : > { %v2788_v37 = vpop.eup %2787 }
 0xe62   : > { %v2127_v38 = vmul.f32 %v2788_v37, %v2786_v29 }
 0xe64   : > { %v2128_v39 = vpack.c.bf16 %v2127_v38, %v2127_v38 }
 0xe66   : > { %2662 = vmatmul.mubr.msk.bf16.vlgmr.msra.gmra.mrb[28].mxu1 %vm797_vm3, %v2128_v39 }
 0xf39   : > { %v2167_v40 = vpop.f32.mrb[28].mxu1 }
 0xf3a   : > { %v2663_v41 = vpop.f32.mrb[29].mxu1  ;;  %2668 = vmatmul.mubr.msk.f32.vlgmr.msra.gmra.mrb[2].mxu0 %vm749_vm2, %v2167_v40 }
 0xf3b   : > { %v2170_v42 = vpop.f32.mrb[30].mxu1 }
 0xf3c   : > { %v2664_v43 = vpop.f32.mrb[31].mxu1 }
0x100d   : > { %v2244_v45 = vpop.f32.mrb[2].mxu0 }
0x100e   : > { %v2670_v46 = vadd.f32 %v2415_v44, %v2244_v45  ;;  %v2669_v47 = vpop.f32.mrb[3].mxu0 }
0x1010   : > { %2249 = vst.msk [vmem:[%s472_s30] sm:$0xff] %vm492_vm1, %v2670_v46 }
0x1011   : > { %2974 = shalt.err (!%p2971_p1)
}
0x1012   : > { %s2975_s26 = scalar_lea.hbm %s3597_s25, 128  ;;  %s2979_s23 = scalar_lea.hbm %s3689_s18, 256 }
0x1013   : > { %p2976_p11 = scmp.ne.s32.totalorder %s3597_s25, %s2975_s26  ;;  %p2980_p3 = scmp.lt.u32.totalorder %s3597_s25, %s3689_s18 }
0x1014   : > { %p2981_p13 = scmp.lt.u32.totalorder %s2979_s23, %s2975_s26  ;;  %p2983_p6 = scmp.lt.u32.totalorder %s2975_s26, %s3597_s25 }
0x1015   : > { %p2977_p8 = pnand %p2976_p11, %p3690_p2 }
0x1016   : > { %p2982_p0 = por %p2981_p13, %p2980_p3 }
0x1017   : > { %p2978_p12 = pneg %p2977_p8 }
0x1018   : > { %p2984_p4 = por %p2983_p6, %p2982_p0 }
0x101a   : > { %p2985_p10 = pnand %p2984_p4, %p2978_p12 }
0x101c   : > { %2988 = shalt.err (!%p2985_p10)
}
0x101d   : > { %2697 = dma.vmem_to_hbm [thread:$0]  (%p3690_p2), %s3599_s9, 128, %s3597_s25, %s2251_s10  }
0x101e PF: > { %s2276_s20 = sand.u32 1, %s3031_s13   ;;  %p3691_p5 = scmp.ne.s32.totalorder %s3675_s21, 0 }
0x101f   : > { %p3692_p7 = scmp.ge.s32.totalorder %s3043_s16, 2  ;;  %s2277_s30 = scalar_lea.sflag [#allocation4], %s2276_s20 }
0x1021   : > { %p2720_p9 = pnand %p3692_p7, %p3691_p5 }
0x1023   : > { %3026 = dma.done.wait (!%p2720_p9), %s2277_s30, 128  }
0x1024   : > { %3028 = vsyncadd (!%p2720_p9), %s2277_s30, 4294967168  ;;  %p28_p1 = scmp.ge.s32.totalorder %s3263_s11, 4   ;;  %s3693_s13 = smov %s3035_s14 }
0x1025   : > { %s3694_s14 = smov %s3039_s15  ;;  %s3695_s15 = smov %s3274_s29 }
0x1026   : > { %s3696_s16 = smov %s3263_s11  ;;  %30 = sbr.rel (!%p28_p1) target bundleno = 16 (0x10), region = 155 }
0x102d   :  { %2282 = vsyncpa [#allocation3], 1 }
0x102e   :  { %2284 = vsyncpa [#allocation3 + $0x1], 1 }
0x102f   :  { %2285 = vsyncpa [#allocation6], 1 }
0x1030   :  { %2287 = vsyncpa [#allocation6 + $0x1], 1 }
0x1031   :  { %2288 = vsyncpa [#allocation9], 1 }
0x1032   :  { %2289 = vsyncpa [#allocation12], 1 }
0x1033   :  { %2290 = vsyncpa [#allocation4], 1 }
0x1034   :  { %2292 = vsyncpa [#allocation4 + $0x1], 1 }

</bundles_post_ra>
